<compile_context>
chip_gen: v7x
topology: tpu7x:2x2x1
jax: 0.10.0
libtpu: 0.0.40
codegen_flags: <defaults>
</compile_context>

<pallas_src>
import functools

import jax
import jax.numpy as jnp
from jax.experimental import pallas as pl
from jax.experimental.pallas import tpu as pltpu


def _vmem():
    return pl.BlockSpec(memory_space=pltpu.MemorySpace.VMEM)


def _layer_norm(x, w, b, eps=1e-5):
    mu = jnp.mean(x, axis=-1, keepdims=True)
    var = jnp.mean(jnp.square(x - mu), axis=-1, keepdims=True)
    return (x - mu) * jax.lax.rsqrt(var + eps) * w + b


# ---------------------------------------------------------------------------
# Pallas kernels
# ---------------------------------------------------------------------------
def resblock_stack_kernel(num_heads,
                          x_ref, mask_ref,
                          ln1_w_ref, ln1_b_ref,
                          wqkv_ref, bqkv_ref,
                          wo_ref, bo_ref,
                          ln2_w_ref, ln2_b_ref,
                          wfc_ref, bfc_ref, wproj_ref, bproj_ref,
                          o_ref):
    """One CLIP ResidualAttentionBlock per grid step (layer axis = program_id(1)).

    The activation is carried in o_ref (its block index is constant across the
    layer axis, so it stays resident in VMEM for the whole layer sweep).
    """
    layer = pl.program_id(1)

    @pl.when(layer == 0)
    def _():
        o_ref[...] = x_ref[...]

    x = o_ref[...]                       # (BT, S, W) f32 residual stream
    BT, S, W = x.shape
    H = num_heads
    Dh = W // H
    scale = Dh ** -0.5
    bf16 = jnp.bfloat16

    # ---- multi-head self attention (pre-LN) --------------------------------
    ln1 = _layer_norm(x, ln1_w_ref[...], ln1_b_ref[...]).astype(bf16)
    # fused QKV projection: (BT*S, W) @ (W, 3W), f32 accumulation
    qkv = jnp.einsum('bsw,wc->bsc', ln1, wqkv_ref[...],
                     preferred_element_type=jnp.float32) + bqkv_ref[...]

    mask = jnp.broadcast_to(mask_ref[...], (BT, S, S))   # hoisted out of head loop

    ctx_heads = []
    for h in range(H):                    # static unroll: scores/PV are per-head
        q = qkv[:, :, h * Dh:(h + 1) * Dh] * scale
        k = qkv[:, :, W + h * Dh:W + (h + 1) * Dh]
        v = qkv[:, :, 2 * W + h * Dh:2 * W + (h + 1) * Dh]
        logits = jnp.einsum('bqd,bkd->bqk', q.astype(bf16), k.astype(bf16),
                            preferred_element_type=jnp.float32) + mask
        m = jnp.max(logits, axis=-1, keepdims=True)       # f32 softmax
        p = jnp.exp(logits - m)
        p = p * pl.reciprocal(jnp.sum(p, axis=-1, keepdims=True), approx=True)
        ctx_heads.append(jnp.einsum('bqk,bkd->bqd', p.astype(bf16),
                                    v.astype(bf16),
                                    preferred_element_type=jnp.float32))
    # concat heads -> single full-width output projection (K = W)
    ctx = jnp.concatenate(ctx_heads, axis=-1).astype(bf16)          # (BT, S, W)
    attn = jnp.einsum('bsc,cw->bsw', ctx, wo_ref[...],
                      preferred_element_type=jnp.float32) + bo_ref[...]
    x1 = x + attn

    # ---- MLP with QuickGELU -------------------------------------------------
    ln2 = _layer_norm(x1, ln2_w_ref[...], ln2_b_ref[...]).astype(bf16)
    h1 = jnp.einsum('bsw,wf->bsf', ln2, wfc_ref[...],
                    preferred_element_type=jnp.float32) + bfc_ref[...]
    h1 = h1 * jax.nn.sigmoid(1.702 * h1)                 # QuickGELU, f32
    h2 = jnp.einsum('bsf,fw->bsw', h1.astype(bf16), wproj_ref[...],
                    preferred_element_type=jnp.float32) + bproj_ref[...]
    o_ref[...] = x1 + h2


def epilogue_kernel(x_ref, lnf_w_ref, lnf_b_ref, onehot_ref, tproj_ref,
                    out_ref, feat_ref):
    """ln_final + EOT-token pooling + text projection, fused."""
    feat = _layer_norm(x_ref[...], lnf_w_ref[...], lnf_b_ref[...])
    feat_ref[...] = feat.astype(feat_ref.dtype)
    # EOT pooling via one-hot (built in glue from text.argmax(-1))
    pooled = jnp.sum(onehot_ref[...][:, :, None] * feat, axis=1)     # (B, W) f32
    out_ref[...] = jnp.dot(pooled.astype(jnp.bfloat16), tproj_ref[...],
                           preferred_element_type=jnp.float32).astype(out_ref.dtype)


# ---------------------------------------------------------------------------
# Parameter construction (mirrors initialize_parameters(); weights pre-transposed
# so every in-kernel matmul is A(M,K) @ B(K,N); matmul weights stored in bf16)
# ---------------------------------------------------------------------------
def init_params(key, *, width, layers, heads, ctx_len, vocab_size, output_dim):
    del heads  # head split is done by column slicing inside the kernel
    W = width
    F = 4 * W
    proj_std = (W ** -0.5) * ((2 * layers) ** -0.5)
    attn_std = W ** -0.5
    fc_std = (2 * W) ** -0.5

    keys = jax.random.split(key, 3 + 4 * layers)
    k_tok, k_pos, k_proj = keys[0], keys[1], keys[2]
    lk = keys[3:]

    wqkv, wo, wfc, wproj = [], [], [], []
    for li in range(layers):
        k0, k1, k2, k3 = lk[4 * li:4 * li + 4]
        in_proj = attn_std * jax.random.normal(k0, (3 * W, W), jnp.float32)
        out_proj = proj_std * jax.random.normal(k1, (W, W), jnp.float32)
        c_fc = fc_std * jax.random.normal(k2, (F, W), jnp.float32)
        c_proj = proj_std * jax.random.normal(k3, (W, F), jnp.float32)
        wqkv.append(in_proj.T)     # (W, 3W), columns ordered [q | k | v]
        wo.append(out_proj.T)      # (W, W)
        wfc.append(c_fc.T)         # (W, 4W)
        wproj.append(c_proj.T)     # (4W, W)

    L = layers
    bf16, f32 = jnp.bfloat16, jnp.float32
    stack = dict(
        ln1_w=jnp.ones((L, 1, W), f32), ln1_b=jnp.zeros((L, 1, W), f32),
        wqkv=jnp.stack(wqkv).astype(bf16), bqkv=jnp.zeros((L, 1, 3 * W), f32),
        wo=jnp.stack(wo).astype(bf16), bo=jnp.zeros((L, 1, W), f32),
        ln2_w=jnp.ones((L, 1, W), f32), ln2_b=jnp.zeros((L, 1, W), f32),
        wfc=jnp.stack(wfc).astype(bf16), bfc=jnp.zeros((L, 1, F), f32),
        wproj=jnp.stack(wproj).astype(bf16), bproj=jnp.zeros((L, 1, W), f32),
    )

    return dict(
        token_embedding=0.02 * jax.random.normal(k_tok, (vocab_size, W), f32),
        positional_embedding=0.01 * jax.random.normal(k_pos, (ctx_len, W), f32),
        lnf_w=jnp.ones((1, W), f32),
        lnf_b=jnp.zeros((1, W), f32),
        text_projection=((W ** -0.5)
                         * jax.random.normal(k_proj, (W, output_dim), f32)).astype(bf16),
        stack=stack,
    )


# ---------------------------------------------------------------------------
# pallas_call wrappers
# ---------------------------------------------------------------------------
def _vmem_limit_bytes(bt, s, w, h):
    # bf16 weights (12 W^2 + biases), double-buffered, + f32 activations/intermediates
    weights = 2 * 2 * (12 * w * w + 16 * w)
    acts = 4 * bt * s * (16 * w) + 4 * bt * h * s * s * 2
    est = int(1.75 * (weights + acts)) + (4 << 20)
    return max(min(est, 96 * 1024 * 1024), 32 * 1024 * 1024)


def resblock_stack(x, mask, stack, num_heads, *, batch_tile=1):
    B, S, W = x.shape
    L = stack['wqkv'].shape[0]
    BT = batch_tile if (batch_tile > 0 and B % batch_tile == 0) else 1
    grid = (B // BT, L)

    def xspec():
        return pl.BlockSpec((BT, S, W), lambda b, l: (b, 0, 0))

    def wspec(*dims):
        n = len(dims)
        return pl.BlockSpec((None,) + dims, lambda b, l, _n=n: (l,) + (0,) * _n)

    in_specs = [
        xspec(),                                          # x (read once per batch tile)
        pl.BlockSpec((S, S), lambda b, l: (0, 0)),        # causal mask (resident)
        wspec(1, W), wspec(1, W),                         # ln1 w, b
        wspec(W, 3 * W), wspec(1, 3 * W),                 # wqkv, bqkv
        wspec(W, W), wspec(1, W),                         # wo, bo
        wspec(1, W), wspec(1, W),                         # ln2 w, b
        wspec(W, 4 * W), wspec(1, 4 * W),                 # wfc, bfc
        wspec(4 * W, W), wspec(1, W),                     # wproj, bproj
    ]

    return pl.pallas_call(
        functools.partial(resblock_stack_kernel, num_heads),
        grid=grid,
        in_specs=in_specs,
        out_specs=xspec(),
        out_shape=jax.ShapeDtypeStruct((B, S, W), jnp.float32),
        compiler_params=pltpu.CompilerParams(
            dimension_semantics=("parallel", "arbitrary"),
            vmem_limit_bytes=_vmem_limit_bytes(BT, S, W, num_heads),
        ),
    )(x, mask,
      stack['ln1_w'], stack['ln1_b'],
      stack['wqkv'], stack['bqkv'],
      stack['wo'], stack['bo'],
      stack['ln2_w'], stack['ln2_b'],
      stack['wfc'], stack['bfc'],
      stack['wproj'], stack['bproj'])


def textual_transformer_forward(text, params, *, num_heads, require_feature=True,
                                batch_tile=1):
    tok_emb = params['token_embedding']          # (vocab, W) f32
    pos_emb = params['positional_embedding']     # (ctx, W)   f32
    B, S = text.shape
    W = tok_emb.shape[1]

    x = jnp.take(tok_emb, text, axis=0) + pos_emb[:S][None]          # glue
    x = x.astype(jnp.float32)

    # pad sequence for sublane alignment (pad keys are causally masked out)
    S_pad = ((S + 7) // 8) * 8
    if S_pad != S:
        x = jnp.pad(x, ((0, 0), (0, S_pad - S), (0, 0)))
    idx = jnp.arange(S_pad)
    mask = jnp.where(idx[None, :] > idx[:, None], -jnp.inf, 0.0).astype(jnp.float32)

    x = resblock_stack(x, mask, params['stack'], num_heads, batch_tile=batch_tile)

    # EOT pooling index -> one-hot (glue)
    eot_idx = jnp.argmax(text, axis=-1)                               # (B,)
    onehot = (idx[None, :] == eot_idx[:, None]).astype(jnp.float32)   # (B, S_pad)

    out_dim = params['text_projection'].shape[1]
    out, feat = pl.pallas_call(
        epilogue_kernel,
        out_shape=(jax.ShapeDtypeStruct((B, out_dim), jnp.float32),
                   jax.ShapeDtypeStruct((B, S_pad, W), jnp.float32)),
        in_specs=[_vmem()] * 5,
        out_specs=(_vmem(), _vmem()),
    )(x, params['lnf_w'], params['lnf_b'], onehot, params['text_projection'])

    feat = feat[:, :S, :]
    if require_feature:
        return out, feat
    return out


# ---------------------------------------------------------------------------
# Pure-JAX reference (same bf16 weights / f32 accumulation) for validation
# ---------------------------------------------------------------------------
def reference_forward(text, params, num_heads):
    bf16, f32 = jnp.bfloat16, jnp.float32
    tok, pos = params['token_embedding'], params['positional_embedding']
    B, S = text.shape
    W = tok.shape[1]
    H = num_heads
    Dh = W // H
    x = jnp.take(tok, text, axis=0) + pos[:S][None]
    i = jnp.arange(S)
    mask = jnp.where(i[None, :] > i[:, None], -jnp.inf, 0.0).astype(f32)
    st = params['stack']
    L = st['wqkv'].shape[0]
    for l in range(L):
        ln1 = _layer_norm(x, st['ln1_w'][l], st['ln1_b'][l])
        qkv = jnp.einsum('bsw,wc->bsc', ln1.astype(bf16), st['wqkv'][l],
                         preferred_element_type=f32) + st['bqkv'][l]
        q = (qkv[..., :W] * (Dh ** -0.5)).reshape(B, S, H, Dh)
        k = qkv[..., W:2 * W].reshape(B, S, H, Dh)
        v = qkv[..., 2 * W:].reshape(B, S, H, Dh)
        logits = jnp.einsum('bqhd,bkhd->bhqk', q.astype(bf16), k.astype(bf16),
                            preferred_element_type=f32) + mask[None, None]
        p = jax.nn.softmax(logits, axis=-1)
        ctx = jnp.einsum('bhqk,bkhd->bqhd', p.astype(bf16), v.astype(bf16),
                         preferred_element_type=f32).reshape(B, S, W)
        attn = jnp.einsum('bsc,cw->bsw', ctx.astype(bf16), st['wo'][l],
                          preferred_element_type=f32) + st['bo'][l]
        x = x + attn
        ln2 = _layer_norm(x, st['ln2_w'][l], st['ln2_b'][l])
        h1 = jnp.einsum('bsw,wf->bsf', ln2.astype(bf16), st['wfc'][l],
                        preferred_element_type=f32) + st['bfc'][l]
        h1 = h1 * jax.nn.sigmoid(1.702 * h1)
        x = x + jnp.einsum('bsf,fw->bsw', h1.astype(bf16), st['wproj'][l],
                           preferred_element_type=f32) + st['bproj'][l]
    feat = _layer_norm(x, params['lnf_w'], params['lnf_b'])
    pooled = feat[jnp.arange(B), jnp.argmax(text, axis=-1)]
    out = jnp.dot(pooled.astype(bf16), params['text_projection'],
                  preferred_element_type=f32)
    return out, feat


if __name__ == "__main__":
    width, n_layers, heads, ctx_len, vocab_size, output_dim = 32, 2, 4, 8, 64, 16
    batch = 2

    key = jax.random.PRNGKey(0)
    pkey, tkey = jax.random.split(key)
    params = init_params(pkey, width=width, layers=n_layers, heads=heads,
                         ctx_len=ctx_len, vocab_size=vocab_size,
                         output_dim=output_dim)
    text = jax.random.randint(tkey, (batch, ctx_len), 1, vocab_size,
                              dtype=jnp.int32)

    fwd = jax.jit(functools.partial(textual_transformer_forward,
                                    num_heads=heads, require_feature=True))
    out, feat = fwd(text, params)
    jax.block_until_ready((out, feat))

    assert out.shape == (batch, output_dim), out.shape
    assert feat.shape == (batch, ctx_len, width), feat.shape
    assert jnp.all(jnp.isfinite(out)) and jnp.all(jnp.isfinite(feat))

    ref_out, ref_feat = reference_forward(text, params, heads)
    assert jnp.allclose(out, ref_out, rtol=5e-2, atol=5e-2), "output mismatch"
    assert jnp.allclose(feat, ref_feat, rtol=5e-2, atol=5e-2), "feature mismatch"
    print("KERNEL_OK")
</pallas_src>

<mosaic_0001>
module attributes {stable_mosaic.version = 11 : i64} {
  func.func @resblock_stack_kernel(%arg0: i32, %arg1: i32, %arg2: memref<1x8x32xf32, #tpu.memory_space<vmem>>, %arg3: memref<8x8xf32, #tpu.memory_space<vmem>>, %arg4: memref<1x1x32xf32, #tpu.memory_space<vmem>>, %arg5: memref<1x1x32xf32, #tpu.memory_space<vmem>>, %arg6: memref<1x32x96xbf16, #tpu.memory_space<vmem>>, %arg7: memref<1x1x96xf32, #tpu.memory_space<vmem>>, %arg8: memref<1x32x32xbf16, #tpu.memory_space<vmem>>, %arg9: memref<1x1x32xf32, #tpu.memory_space<vmem>>, %arg10: memref<1x1x32xf32, #tpu.memory_space<vmem>>, %arg11: memref<1x1x32xf32, #tpu.memory_space<vmem>>, %arg12: memref<1x32x128xbf16, #tpu.memory_space<vmem>>, %arg13: memref<1x1x128xf32, #tpu.memory_space<vmem>>, %arg14: memref<1x128x32xbf16, #tpu.memory_space<vmem>>, %arg15: memref<1x1x32xf32, #tpu.memory_space<vmem>>, %arg16: memref<1x8x32xf32, #tpu.memory_space<vmem>>) attributes {dimension_semantics = [#tpu.dimension_semantics<parallel>, #tpu.dimension_semantics<arbitrary>], iteration_bounds = array<i64: 2, 2>, scalar_prefetch = 0 : i64, scratch_operands = 0 : i64, tpu.core_type = #tpu.core_type<tc>, window_params = [{transform_indices = @transform_0, window_bounds = array<i64: 1, 8, 32>}, {pipeline_mode = #tpu.pipeline_mode<synchronous>, transform_indices = @transform_1, window_bounds = array<i64: 8, 8>}, {transform_indices = @transform_2, window_bounds = array<i64: 1, 1, 32>}, {transform_indices = @transform_3, window_bounds = array<i64: 1, 1, 32>}, {transform_indices = @transform_4, window_bounds = array<i64: 1, 32, 96>}, {transform_indices = @transform_5, window_bounds = array<i64: 1, 1, 96>}, {transform_indices = @transform_6, window_bounds = array<i64: 1, 32, 32>}, {transform_indices = @transform_7, window_bounds = array<i64: 1, 1, 32>}, {transform_indices = @transform_8, window_bounds = array<i64: 1, 1, 32>}, {transform_indices = @transform_9, window_bounds = array<i64: 1, 1, 32>}, {transform_indices = @transform_10, window_bounds = array<i64: 1, 32, 128>}, {transform_indices = @transform_11, window_bounds = array<i64: 1, 1, 128>}, {transform_indices = @transform_12, window_bounds = array<i64: 1, 128, 32>}, {transform_indices = @transform_13, window_bounds = array<i64: 1, 1, 32>}, {transform_indices = @transform_14, window_bounds = array<i64: 1, 8, 32>}]} {
    %c0_i32 = arith.constant 0 : i32
    %0 = arith.cmpi eq, %arg1, %c0_i32 : i32
    %1 = arith.extui %0 : i1 to i32
    %c0_i32_0 = arith.constant 0 : i32
    %2 = arith.cmpi ne, %1, %c0_i32_0 : i32
    scf.if %2 {
      %c0_79 = arith.constant 0 : index
      %c0_80 = arith.constant 0 : index
      %c0_81 = arith.constant 0 : index
      %198 = vector.load %arg2[%c0_79, %c0_80, %c0_81] : memref<1x8x32xf32, #tpu.memory_space<vmem>>, vector<1x8x32xf32>
      %c0_82 = arith.constant 0 : index
      %c0_83 = arith.constant 0 : index
      %c0_84 = arith.constant 0 : index
      %199 = vector.load %arg16[%c0_82, %c0_83, %c0_84] : memref<1x8x32xf32, #tpu.memory_space<vmem>>, vector<1x8x32xf32>
      tpu.vector_store %arg16[%c0_82, %c0_83, %c0_84], %198 {strides = array<i32>} : memref<1x8x32xf32, #tpu.memory_space<vmem>>, vector<1x8x32xf32>,
    } else {
    }
    %c0 = arith.constant 0 : index
    %c0_1 = arith.constant 0 : index
    %c0_2 = arith.constant 0 : index
    %3 = vector.load %arg16[%c0, %c0_1, %c0_2] : memref<1x8x32xf32, #tpu.memory_space<vmem>>, vector<1x8x32xf32>
    %c0_3 = arith.constant 0 : index
    %c0_4 = arith.constant 0 : index
    %c0_5 = arith.constant 0 : index
    %4 = vector.load %arg4[%c0_3, %c0_4, %c0_5] : memref<1x1x32xf32, #tpu.memory_space<vmem>>, vector<1x1x32xf32>
    %5 = vector.shape_cast %4 : vector<1x1x32xf32> to vector<1x32xf32>
    %c0_6 = arith.constant 0 : index
    %c0_7 = arith.constant 0 : index
    %c0_8 = arith.constant 0 : index
    %6 = vector.load %arg5[%c0_6, %c0_7, %c0_8] : memref<1x1x32xf32, #tpu.memory_space<vmem>>, vector<1x1x32xf32>
    %7 = vector.shape_cast %6 : vector<1x1x32xf32> to vector<1x32xf32>
    %cst = arith.constant dense<0.000000e+00> : vector<1x8xf32>
    %8 = vector.multi_reduction <add>, %3, %cst [2] : vector<1x8x32xf32> to vector<1x8xf32>
    %9 = vector.shape_cast %8 : vector<1x8xf32> to vector<1x8x1xf32>
    %cst_9 = arith.constant 3.200000e+01 : f32
    %10 = vector.broadcast %cst_9 : f32 to vector<1x8x1xf32>
    %11 = arith.divf %9, %10 : vector<1x8x1xf32>
    %12 = vector.broadcast %11 : vector<1x8x1xf32> to vector<1x8x32xf32>
    %13 = arith.subf %3, %12 : vector<1x8x32xf32>
    %14 = arith.mulf %13, %13 : vector<1x8x32xf32>
    %cst_10 = arith.constant dense<0.000000e+00> : vector<1x8xf32>
    %15 = vector.multi_reduction <add>, %14, %cst_10 [2] : vector<1x8x32xf32> to vector<1x8xf32>
    %16 = vector.shape_cast %15 : vector<1x8xf32> to vector<1x8x1xf32>
    %cst_11 = arith.constant 3.200000e+01 : f32
    %17 = vector.broadcast %cst_11 : f32 to vector<1x8x1xf32>
    %18 = arith.divf %16, %17 : vector<1x8x1xf32>
    %19 = vector.broadcast %11 : vector<1x8x1xf32> to vector<1x8x32xf32>
    %20 = arith.subf %3, %19 : vector<1x8x32xf32>
    %cst_12 = arith.constant 9.99999974E-6 : f32
    %21 = vector.broadcast %cst_12 : f32 to vector<1x8x1xf32>
    %22 = arith.addf %18, %21 : vector<1x8x1xf32>
    %23 = math.rsqrt %22 : vector<1x8x1xf32>
    %24 = vector.broadcast %23 : vector<1x8x1xf32> to vector<1x8x32xf32>
    %25 = arith.mulf %20, %24 : vector<1x8x32xf32>
    %26 = vector.shape_cast %5 : vector<1x32xf32> to vector<1x1x32xf32>
    %27 = vector.broadcast %26 : vector<1x1x32xf32> to vector<1x8x32xf32>
    %28 = arith.mulf %25, %27 : vector<1x8x32xf32>
    %29 = vector.shape_cast %7 : vector<1x32xf32> to vector<1x1x32xf32>
    %30 = vector.broadcast %29 : vector<1x1x32xf32> to vector<1x8x32xf32>
    %31 = arith.addf %28, %30 : vector<1x8x32xf32>
    %32 = arith.truncf %31 : vector<1x8x32xf32> to vector<1x8x32xbf16>
    %c0_13 = arith.constant 0 : index
    %c0_14 = arith.constant 0 : index
    %c0_15 = arith.constant 0 : index
    %33 = vector.load %arg6[%c0_13, %c0_14, %c0_15] : memref<1x32x96xbf16, #tpu.memory_space<vmem>>, vector<1x32x96xbf16>
    %34 = vector.shape_cast %33 : vector<1x32x96xbf16> to vector<32x96xbf16>
    "tpu.trace_start"() <{level = 10 : i32, message = "bsw,wc->bsc"}> : () -> ()
    %cst_16 = arith.constant dense<0.000000e+00> : vector<1x8x96xf32>
    %35 = tpu.matmul %32, %34, %cst_16 {dimension_numbers = #tpu.dot_dimension_numbers<[2], [0], [0, 1], [1], [0, 0, 0, 1, 1, 1], [], []>} : vector<1x8x32xbf16>, vector<32x96xbf16>, vector<1x8x96xf32> -> vector<1x8x96xf32>
    "tpu.trace_stop"() : () -> ()
    %c0_17 = arith.constant 0 : index
    %c0_18 = arith.constant 0 : index
    %c0_19 = arith.constant 0 : index
    %36 = vector.load %arg7[%c0_17, %c0_18, %c0_19] : memref<1x1x96xf32, #tpu.memory_space<vmem>>, vector<1x1x96xf32>
    %37 = vector.shape_cast %36 : vector<1x1x96xf32> to vector<1x96xf32>
    %38 = vector.shape_cast %37 : vector<1x96xf32> to vector<1x1x96xf32>
    %39 = vector.broadcast %38 : vector<1x1x96xf32> to vector<1x8x96xf32>
    %40 = arith.addf %35, %39 : vector<1x8x96xf32>
    %c0_20 = arith.constant 0 : index
    %c0_21 = arith.constant 0 : index
    %41 = vector.load %arg3[%c0_20, %c0_21] : memref<8x8xf32, #tpu.memory_space<vmem>>, vector<8x8xf32>
    %42 = vector.shape_cast %41 : vector<8x8xf32> to vector<1x8x8xf32>
    %43 = vector.extract_strided_slice %40 {offsets = [0, 0, 0], sizes = [1, 8, 8], strides = [1, 1, 1]} : vector<1x8x96xf32> to vector<1x8x8xf32>
    %cst_22 = arith.constant 0.353553385 : f32
    %44 = vector.broadcast %cst_22 : f32 to vector<1x8x8xf32>
    %45 = arith.mulf %43, %44 : vector<1x8x8xf32>
    %46 = vector.extract_strided_slice %40 {offsets = [0, 0, 32], sizes = [1, 8, 8], strides = [1, 1, 1]} : vector<1x8x96xf32> to vector<1x8x8xf32>
    %47 = vector.extract_strided_slice %40 {offsets = [0, 0, 64], sizes = [1, 8, 8], strides = [1, 1, 1]} : vector<1x8x96xf32> to vector<1x8x8xf32>
    %48 = arith.truncf %45 : vector<1x8x8xf32> to vector<1x8x8xbf16>
    %49 = arith.truncf %46 : vector<1x8x8xf32> to vector<1x8x8xbf16>
    "tpu.trace_start"() <{level = 10 : i32, message = "bqd,bkd->bqk"}> : () -> ()
    %cst_23 = arith.constant dense<0.000000e+00> : vector<1x8x8xf32>
    %50 = tpu.matmul %48, %49, %cst_23 {dimension_numbers = #tpu.dot_dimension_numbers<[2], [2], [1], [1], [0, 0, 0, 1, 1, 1], [0], [0]>} : vector<1x8x8xbf16>, vector<1x8x8xbf16>, vector<1x8x8xf32> -> vector<1x8x8xf32>
    "tpu.trace_stop"() : () -> ()
    %51 = arith.addf %50, %42 : vector<1x8x8xf32>
    %cst_24 = arith.constant dense<0xFF800000> : vector<1x8xf32>
    %52 = vector.multi_reduction <maximumf>, %51, %cst_24 [2] : vector<1x8x8xf32> to vector<1x8xf32>
    %53 = vector.shape_cast %52 : vector<1x8xf32> to vector<1x8x1xf32>
    %54 = vector.broadcast %53 : vector<1x8x1xf32> to vector<1x8x8xf32>
    %55 = arith.subf %51, %54 : vector<1x8x8xf32>
    %56 = math.exp %55 : vector<1x8x8xf32>
    %cst_25 = arith.constant dense<0.000000e+00> : vector<1x8xf32>
    %57 = vector.multi_reduction <add>, %56, %cst_25 [2] : vector<1x8x8xf32> to vector<1x8xf32>
    %58 = vector.shape_cast %57 : vector<1x8xf32> to vector<1x8x1xf32>
    %59 = tpu.reciprocal %58 {approx = true} : vector<1x8x1xf32> -> vector<1x8x1xf32>
    %60 = vector.broadcast %59 : vector<1x8x1xf32> to vector<1x8x8xf32>
    %61 = arith.mulf %56, %60 : vector<1x8x8xf32>
    %62 = arith.truncf %61 : vector<1x8x8xf32> to vector<1x8x8xbf16>
    %63 = arith.truncf %47 : vector<1x8x8xf32> to vector<1x8x8xbf16>
    "tpu.trace_start"() <{level = 10 : i32, message = "bqk,bkd->bqd"}> : () -> ()
    %cst_26 = arith.constant dense<0.000000e+00> : vector<1x8x8xf32>
    %64 = tpu.matmul %62, %63, %cst_26 {dimension_numbers = #tpu.dot_dimension_numbers<[2], [1], [1], [2], [0, 0, 0, 1, 1, 2], [0], [0]>} : vector<1x8x8xbf16>, vector<1x8x8xbf16>, vector<1x8x8xf32> -> vector<1x8x8xf32>
    "tpu.trace_stop"() : () -> ()
    %65 = vector.extract_strided_slice %40 {offsets = [0, 0, 8], sizes = [1, 8, 8], strides = [1, 1, 1]} : vector<1x8x96xf32> to vector<1x8x8xf32>
    %cst_27 = arith.constant 0.353553385 : f32
    %66 = vector.broadcast %cst_27 : f32 to vector<1x8x8xf32>
    %67 = arith.mulf %65, %66 : vector<1x8x8xf32>
    %68 = vector.extract_strided_slice %40 {offsets = [0, 0, 40], sizes = [1, 8, 8], strides = [1, 1, 1]} : vector<1x8x96xf32> to vector<1x8x8xf32>
    %69 = vector.extract_strided_slice %40 {offsets = [0, 0, 72], sizes = [1, 8, 8], strides = [1, 1, 1]} : vector<1x8x96xf32> to vector<1x8x8xf32>
    %70 = arith.truncf %67 : vector<1x8x8xf32> to vector<1x8x8xbf16>
    %71 = arith.truncf %68 : vector<1x8x8xf32> to vector<1x8x8xbf16>
    "tpu.trace_start"() <{level = 10 : i32, message = "bqd,bkd->bqk"}> : () -> ()
    %cst_28 = arith.constant dense<0.000000e+00> : vector<1x8x8xf32>
    %72 = tpu.matmul %70, %71, %cst_28 {dimension_numbers = #tpu.dot_dimension_numbers<[2], [2], [1], [1], [0, 0, 0, 1, 1, 1], [0], [0]>} : vector<1x8x8xbf16>, vector<1x8x8xbf16>, vector<1x8x8xf32> -> vector<1x8x8xf32>
    "tpu.trace_stop"() : () -> ()
    %73 = arith.addf %72, %42 : vector<1x8x8xf32>
    %cst_29 = arith.constant dense<0xFF800000> : vector<1x8xf32>
    %74 = vector.multi_reduction <maximumf>, %73, %cst_29 [2] : vector<1x8x8xf32> to vector<1x8xf32>
    %75 = vector.shape_cast %74 : vector<1x8xf32> to vector<1x8x1xf32>
    %76 = vector.broadcast %75 : vector<1x8x1xf32> to vector<1x8x8xf32>
    %77 = arith.subf %73, %76 : vector<1x8x8xf32>
    %78 = math.exp %77 : vector<1x8x8xf32>
    %cst_30 = arith.constant dense<0.000000e+00> : vector<1x8xf32>
    %79 = vector.multi_reduction <add>, %78, %cst_30 [2] : vector<1x8x8xf32> to vector<1x8xf32>
    %80 = vector.shape_cast %79 : vector<1x8xf32> to vector<1x8x1xf32>
    %81 = tpu.reciprocal %80 {approx = true} : vector<1x8x1xf32> -> vector<1x8x1xf32>
    %82 = vector.broadcast %81 : vector<1x8x1xf32> to vector<1x8x8xf32>
    %83 = arith.mulf %78, %82 : vector<1x8x8xf32>
    %84 = arith.truncf %83 : vector<1x8x8xf32> to vector<1x8x8xbf16>
    %85 = arith.truncf %69 : vector<1x8x8xf32> to vector<1x8x8xbf16>
    "tpu.trace_start"() <{level = 10 : i32, message = "bqk,bkd->bqd"}> : () -> ()
    %cst_31 = arith.constant dense<0.000000e+00> : vector<1x8x8xf32>
    %86 = tpu.matmul %84, %85, %cst_31 {dimension_numbers = #tpu.dot_dimension_numbers<[2], [1], [1], [2], [0, 0, 0, 1, 1, 2], [0], [0]>} : vector<1x8x8xbf16>, vector<1x8x8xbf16>, vector<1x8x8xf32> -> vector<1x8x8xf32>
    "tpu.trace_stop"() : () -> ()
    %87 = vector.extract_strided_slice %40 {offsets = [0, 0, 16], sizes = [1, 8, 8], strides = [1, 1, 1]} : vector<1x8x96xf32> to vector<1x8x8xf32>
    %cst_32 = arith.constant 0.353553385 : f32
    %88 = vector.broadcast %cst_32 : f32 to vector<1x8x8xf32>
    %89 = arith.mulf %87, %88 : vector<1x8x8xf32>
    %90 = vector.extract_strided_slice %40 {offsets = [0, 0, 48], sizes = [1, 8, 8], strides = [1, 1, 1]} : vector<1x8x96xf32> to vector<1x8x8xf32>
    %91 = vector.extract_strided_slice %40 {offsets = [0, 0, 80], sizes = [1, 8, 8], strides = [1, 1, 1]} : vector<1x8x96xf32> to vector<1x8x8xf32>
    %92 = arith.truncf %89 : vector<1x8x8xf32> to vector<1x8x8xbf16>
    %93 = arith.truncf %90 : vector<1x8x8xf32> to vector<1x8x8xbf16>
    "tpu.trace_start"() <{level = 10 : i32, message = "bqd,bkd->bqk"}> : () -> ()
    %cst_33 = arith.constant dense<0.000000e+00> : vector<1x8x8xf32>
    %94 = tpu.matmul %92, %93, %cst_33 {dimension_numbers = #tpu.dot_dimension_numbers<[2], [2], [1], [1], [0, 0, 0, 1, 1, 1], [0], [0]>} : vector<1x8x8xbf16>, vector<1x8x8xbf16>, vector<1x8x8xf32> -> vector<1x8x8xf32>
    "tpu.trace_stop"() : () -> ()
    %95 = arith.addf %94, %42 : vector<1x8x8xf32>
    %cst_34 = arith.constant dense<0xFF800000> : vector<1x8xf32>
    %96 = vector.multi_reduction <maximumf>, %95, %cst_34 [2] : vector<1x8x8xf32> to vector<1x8xf32>
    %97 = vector.shape_cast %96 : vector<1x8xf32> to vector<1x8x1xf32>
    %98 = vector.broadcast %97 : vector<1x8x1xf32> to vector<1x8x8xf32>
    %99 = arith.subf %95, %98 : vector<1x8x8xf32>
    %100 = math.exp %99 : vector<1x8x8xf32>
    %cst_35 = arith.constant dense<0.000000e+00> : vector<1x8xf32>
    %101 = vector.multi_reduction <add>, %100, %cst_35 [2] : vector<1x8x8xf32> to vector<1x8xf32>
    %102 = vector.shape_cast %101 : vector<1x8xf32> to vector<1x8x1xf32>
    %103 = tpu.reciprocal %102 {approx = true} : vector<1x8x1xf32> -> vector<1x8x1xf32>
    %104 = vector.broadcast %103 : vector<1x8x1xf32> to vector<1x8x8xf32>
    %105 = arith.mulf %100, %104 : vector<1x8x8xf32>
    %106 = arith.truncf %105 : vector<1x8x8xf32> to vector<1x8x8xbf16>
    %107 = arith.truncf %91 : vector<1x8x8xf32> to vector<1x8x8xbf16>
    "tpu.trace_start"() <{level = 10 : i32, message = "bqk,bkd->bqd"}> : () -> ()
    %cst_36 = arith.constant dense<0.000000e+00> : vector<1x8x8xf32>
    %108 = tpu.matmul %106, %107, %cst_36 {dimension_numbers = #tpu.dot_dimension_numbers<[2], [1], [1], [2], [0, 0, 0, 1, 1, 2], [0], [0]>} : vector<1x8x8xbf16>, vector<1x8x8xbf16>, vector<1x8x8xf32> -> vector<1x8x8xf32>
    "tpu.trace_stop"() : () -> ()
    %109 = vector.extract_strided_slice %40 {offsets = [0, 0, 24], sizes = [1, 8, 8], strides = [1, 1, 1]} : vector<1x8x96xf32> to vector<1x8x8xf32>
    %cst_37 = arith.constant 0.353553385 : f32
    %110 = vector.broadcast %cst_37 : f32 to vector<1x8x8xf32>
    %111 = arith.mulf %109, %110 : vector<1x8x8xf32>
    %112 = vector.extract_strided_slice %40 {offsets = [0, 0, 56], sizes = [1, 8, 8], strides = [1, 1, 1]} : vector<1x8x96xf32> to vector<1x8x8xf32>
    %113 = vector.extract_strided_slice %40 {offsets = [0, 0, 88], sizes = [1, 8, 8], strides = [1, 1, 1]} : vector<1x8x96xf32> to vector<1x8x8xf32>
    %114 = arith.truncf %111 : vector<1x8x8xf32> to vector<1x8x8xbf16>
    %115 = arith.truncf %112 : vector<1x8x8xf32> to vector<1x8x8xbf16>
    "tpu.trace_start"() <{level = 10 : i32, message = "bqd,bkd->bqk"}> : () -> ()
    %cst_38 = arith.constant dense<0.000000e+00> : vector<1x8x8xf32>
    %116 = tpu.matmul %114, %115, %cst_38 {dimension_numbers = #tpu.dot_dimension_numbers<[2], [2], [1], [1], [0, 0, 0, 1, 1, 1], [0], [0]>} : vector<1x8x8xbf16>, vector<1x8x8xbf16>, vector<1x8x8xf32> -> vector<1x8x8xf32>
    "tpu.trace_stop"() : () -> ()
    %117 = arith.addf %116, %42 : vector<1x8x8xf32>
    %cst_39 = arith.constant dense<0xFF800000> : vector<1x8xf32>
    %118 = vector.multi_reduction <maximumf>, %117, %cst_39 [2] : vector<1x8x8xf32> to vector<1x8xf32>
    %119 = vector.shape_cast %118 : vector<1x8xf32> to vector<1x8x1xf32>
    %120 = vector.broadcast %119 : vector<1x8x1xf32> to vector<1x8x8xf32>
    %121 = arith.subf %117, %120 : vector<1x8x8xf32>
    %122 = math.exp %121 : vector<1x8x8xf32>
    %cst_40 = arith.constant dense<0.000000e+00> : vector<1x8xf32>
    %123 = vector.multi_reduction <add>, %122, %cst_40 [2] : vector<1x8x8xf32> to vector<1x8xf32>
    %124 = vector.shape_cast %123 : vector<1x8xf32> to vector<1x8x1xf32>
    %125 = tpu.reciprocal %124 {approx = true} : vector<1x8x1xf32> -> vector<1x8x1xf32>
    %126 = vector.broadcast %125 : vector<1x8x1xf32> to vector<1x8x8xf32>
    %127 = arith.mulf %122, %126 : vector<1x8x8xf32>
    %128 = arith.truncf %127 : vector<1x8x8xf32> to vector<1x8x8xbf16>
    %129 = arith.truncf %113 : vector<1x8x8xf32> to vector<1x8x8xbf16>
    "tpu.trace_start"() <{level = 10 : i32, message = "bqk,bkd->bqd"}> : () -> ()
    %cst_41 = arith.constant dense<0.000000e+00> : vector<1x8x8xf32>
    %130 = tpu.matmul %128, %129, %cst_41 {dimension_numbers = #tpu.dot_dimension_numbers<[2], [1], [1], [2], [0, 0, 0, 1, 1, 2], [0], [0]>} : vector<1x8x8xbf16>, vector<1x8x8xbf16>, vector<1x8x8xf32> -> vector<1x8x8xf32>
    "tpu.trace_stop"() : () -> ()
    %131 = tpu.concatenate %64, %86, %108, %130 in 2 : vector<1x8x8xf32>, vector<1x8x8xf32>, vector<1x8x8xf32>, vector<1x8x8xf32> -> vector<1x8x32xf32>
    %132 = arith.truncf %131 : vector<1x8x32xf32> to vector<1x8x32xbf16>
    %c0_42 = arith.constant 0 : index
    %c0_43 = arith.constant 0 : index
    %c0_44 = arith.constant 0 : index
    %133 = vector.load %arg8[%c0_42, %c0_43, %c0_44] : memref<1x32x32xbf16, #tpu.memory_space<vmem>>, vector<1x32x32xbf16>
    %134 = vector.shape_cast %133 : vector<1x32x32xbf16> to vector<32x32xbf16>
    "tpu.trace_start"() <{level = 10 : i32, message = "bsc,cw->bsw"}> : () -> ()
    %cst_45 = arith.constant dense<0.000000e+00> : vector<1x8x32xf32>
    %135 = tpu.matmul %132, %134, %cst_45 {dimension_numbers = #tpu.dot_dimension_numbers<[2], [0], [0, 1], [1], [0, 0, 0, 1, 1, 1], [], []>} : vector<1x8x32xbf16>, vector<32x32xbf16>, vector<1x8x32xf32> -> vector<1x8x32xf32>
    "tpu.trace_stop"() : () -> ()
    %c0_46 = arith.constant 0 : index
    %c0_47 = arith.constant 0 : index
    %c0_48 = arith.constant 0 : index
    %136 = vector.load %arg9[%c0_46, %c0_47, %c0_48] : memref<1x1x32xf32, #tpu.memory_space<vmem>>, vector<1x1x32xf32>
    %137 = vector.shape_cast %136 : vector<1x1x32xf32> to vector<1x32xf32>
    %138 = vector.shape_cast %137 : vector<1x32xf32> to vector<1x1x32xf32>
    %139 = vector.broadcast %138 : vector<1x1x32xf32> to vector<1x8x32xf32>
    %140 = arith.addf %135, %139 : vector<1x8x32xf32>
    %141 = arith.addf %3, %140 : vector<1x8x32xf32>
    %c0_49 = arith.constant 0 : index
    %c0_50 = arith.constant 0 : index
    %c0_51 = arith.constant 0 : index
    %142 = vector.load %arg10[%c0_49, %c0_50, %c0_51] : memref<1x1x32xf32, #tpu.memory_space<vmem>>, vector<1x1x32xf32>
    %143 = vector.shape_cast %142 : vector<1x1x32xf32> to vector<1x32xf32>
    %c0_52 = arith.constant 0 : index
    %c0_53 = arith.constant 0 : index
    %c0_54 = arith.constant 0 : index
    %144 = vector.load %arg11[%c0_52, %c0_53, %c0_54] : memref<1x1x32xf32, #tpu.memory_space<vmem>>, vector<1x1x32xf32>
    %145 = vector.shape_cast %144 : vector<1x1x32xf32> to vector<1x32xf32>
    %cst_55 = arith.constant dense<0.000000e+00> : vector<1x8xf32>
    %146 = vector.multi_reduction <add>, %141, %cst_55 [2] : vector<1x8x32xf32> to vector<1x8xf32>
    %147 = vector.shape_cast %146 : vector<1x8xf32> to vector<1x8x1xf32>
    %cst_56 = arith.constant 3.200000e+01 : f32
    %148 = vector.broadcast %cst_56 : f32 to vector<1x8x1xf32>
    %149 = arith.divf %147, %148 : vector<1x8x1xf32>
    %150 = vector.broadcast %149 : vector<1x8x1xf32> to vector<1x8x32xf32>
    %151 = arith.subf %141, %150 : vector<1x8x32xf32>
    %152 = arith.mulf %151, %151 : vector<1x8x32xf32>
    %cst_57 = arith.constant dense<0.000000e+00> : vector<1x8xf32>
    %153 = vector.multi_reduction <add>, %152, %cst_57 [2] : vector<1x8x32xf32> to vector<1x8xf32>
    %154 = vector.shape_cast %153 : vector<1x8xf32> to vector<1x8x1xf32>
    %cst_58 = arith.constant 3.200000e+01 : f32
    %155 = vector.broadcast %cst_58 : f32 to vector<1x8x1xf32>
    %156 = arith.divf %154, %155 : vector<1x8x1xf32>
    %157 = vector.broadcast %149 : vector<1x8x1xf32> to vector<1x8x32xf32>
    %158 = arith.subf %141, %157 : vector<1x8x32xf32>
    %cst_59 = arith.constant 9.99999974E-6 : f32
    %159 = vector.broadcast %cst_59 : f32 to vector<1x8x1xf32>
    %160 = arith.addf %156, %159 : vector<1x8x1xf32>
    %161 = math.rsqrt %160 : vector<1x8x1xf32>
    %162 = vector.broadcast %161 : vector<1x8x1xf32> to vector<1x8x32xf32>
    %163 = arith.mulf %158, %162 : vector<1x8x32xf32>
    %164 = vector.shape_cast %143 : vector<1x32xf32> to vector<1x1x32xf32>
    %165 = vector.broadcast %164 : vector<1x1x32xf32> to vector<1x8x32xf32>
    %166 = arith.mulf %163, %165 : vector<1x8x32xf32>
    %167 = vector.shape_cast %145 : vector<1x32xf32> to vector<1x1x32xf32>
    %168 = vector.broadcast %167 : vector<1x1x32xf32> to vector<1x8x32xf32>
    %169 = arith.addf %166, %168 : vector<1x8x32xf32>
    %170 = arith.truncf %169 : vector<1x8x32xf32> to vector<1x8x32xbf16>
    %c0_60 = arith.constant 0 : index
    %c0_61 = arith.constant 0 : index
    %c0_62 = arith.constant 0 : index
    %171 = vector.load %arg12[%c0_60, %c0_61, %c0_62] : memref<1x32x128xbf16, #tpu.memory_space<vmem>>, vector<1x32x128xbf16>
    %172 = vector.shape_cast %171 : vector<1x32x128xbf16> to vector<32x128xbf16>
    "tpu.trace_start"() <{level = 10 : i32, message = "bsw,wf->bsf"}> : () -> ()
    %cst_63 = arith.constant dense<0.000000e+00> : vector<1x8x128xf32>
    %173 = tpu.matmul %170, %172, %cst_63 {dimension_numbers = #tpu.dot_dimension_numbers<[2], [0], [0, 1], [1], [0, 0, 0, 1, 1, 1], [], []>} : vector<1x8x32xbf16>, vector<32x128xbf16>, vector<1x8x128xf32> -> vector<1x8x128xf32>
    "tpu.trace_stop"() : () -> ()
    %c0_64 = arith.constant 0 : index
    %c0_65 = arith.constant 0 : index
    %c0_66 = arith.constant 0 : index
    %174 = vector.load %arg13[%c0_64, %c0_65, %c0_66] : memref<1x1x128xf32, #tpu.memory_space<vmem>>, vector<1x1x128xf32>
    %175 = vector.shape_cast %174 : vector<1x1x128xf32> to vector<1x128xf32>
    %176 = vector.shape_cast %175 : vector<1x128xf32> to vector<1x1x128xf32>
    %177 = vector.broadcast %176 : vector<1x1x128xf32> to vector<1x8x128xf32>
    %178 = arith.addf %173, %177 : vector<1x8x128xf32>
    %cst_67 = arith.constant 1.702000e+00 : f32
    %179 = vector.broadcast %cst_67 : f32 to vector<1x8x128xf32>
    %180 = arith.mulf %179, %178 : vector<1x8x128xf32>
    %181 = arith.negf %180 : vector<1x8x128xf32>
    %182 = math.exp %181 : vector<1x8x128xf32>
    %cst_68 = arith.constant 1.000000e+00 : f32
    %183 = vector.broadcast %cst_68 : f32 to vector<1x8x128xf32>
    %184 = arith.addf %183, %182 : vector<1x8x128xf32>
    %185 = arith.divf %183, %184 : vector<1x8x128xf32>
    %186 = arith.mulf %178, %185 : vector<1x8x128xf32>
    %187 = arith.truncf %186 : vector<1x8x128xf32> to vector<1x8x128xbf16>
    %c0_69 = arith.constant 0 : index
    %c0_70 = arith.constant 0 : index
    %c0_71 = arith.constant 0 : index
    %188 = vector.load %arg14[%c0_69, %c0_70, %c0_71] : memref<1x128x32xbf16, #tpu.memory_space<vmem>>, vector<1x128x32xbf16>
    %189 = vector.shape_cast %188 : vector<1x128x32xbf16> to vector<128x32xbf16>
    "tpu.trace_start"() <{level = 10 : i32, message = "bsf,fw->bsw"}> : () -> ()
    %cst_72 = arith.constant dense<0.000000e+00> : vector<1x8x32xf32>
    %190 = tpu.matmul %187, %189, %cst_72 {dimension_numbers = #tpu.dot_dimension_numbers<[2], [0], [0, 1], [1], [0, 0, 0, 1, 1, 1], [], []>} : vector<1x8x128xbf16>, vector<128x32xbf16>, vector<1x8x32xf32> -> vector<1x8x32xf32>
    "tpu.trace_stop"() : () -> ()
    %c0_73 = arith.constant 0 : index
    %c0_74 = arith.constant 0 : index
    %c0_75 = arith.constant 0 : index
    %191 = vector.load %arg15[%c0_73, %c0_74, %c0_75] : memref<1x1x32xf32, #tpu.memory_space<vmem>>, vector<1x1x32xf32>
    %192 = vector.shape_cast %191 : vector<1x1x32xf32> to vector<1x32xf32>
    %193 = vector.shape_cast %192 : vector<1x32xf32> to vector<1x1x32xf32>
    %194 = vector.broadcast %193 : vector<1x1x32xf32> to vector<1x8x32xf32>
    %195 = arith.addf %190, %194 : vector<1x8x32xf32>
    %196 = arith.addf %141, %195 : vector<1x8x32xf32>
    %c0_76 = arith.constant 0 : index
    %c0_77 = arith.constant 0 : index
    %c0_78 = arith.constant 0 : index
    %197 = vector.load %arg16[%c0_76, %c0_77, %c0_78] : memref<1x8x32xf32, #tpu.memory_space<vmem>>, vector<1x8x32xf32>
    tpu.vector_store %arg16[%c0_76, %c0_77, %c0_78], %196 {strides = array<i32>} : memref<1x8x32xf32, #tpu.memory_space<vmem>>, vector<1x8x32xf32>,
    return
  }
  func.func @transform_0(%arg0: i32, %arg1: i32) -> (i32, i32, i32) {
    %c0_i32 = arith.constant 0 : i32
    %c0_i32_0 = arith.constant 0 : i32
    %c0_i32_1 = arith.constant 0 : i32
    return %arg0, %c0_i32, %c0_i32_0 : i32, i32, i32
  }
  func.func @transform_1(%arg0: i32, %arg1: i32) -> (i32, i32) {
    %c0_i32 = arith.constant 0 : i32
    %c0_i32_0 = arith.constant 0 : i32
    %c0_i32_1 = arith.constant 0 : i32
    return %c0_i32, %c0_i32_0 : i32, i32
  }
  func.func @transform_2(%arg0: i32, %arg1: i32) -> (i32, i32, i32) {
    %c0_i32 = arith.constant 0 : i32
    %c0_i32_0 = arith.constant 0 : i32
    %c0_i32_1 = arith.constant 0 : i32
    return %arg1, %c0_i32, %c0_i32_0 : i32, i32, i32
  }
  func.func @transform_3(%arg0: i32, %arg1: i32) -> (i32, i32, i32) {
    %c0_i32 = arith.constant 0 : i32
    %c0_i32_0 = arith.constant 0 : i32
    %c0_i32_1 = arith.constant 0 : i32
    return %arg1, %c0_i32, %c0_i32_0 : i32, i32, i32
  }
  func.func @transform_4(%arg0: i32, %arg1: i32) -> (i32, i32, i32) {
    %c0_i32 = arith.constant 0 : i32
    %c0_i32_0 = arith.constant 0 : i32
    %c0_i32_1 = arith.constant 0 : i32
    return %arg1, %c0_i32, %c0_i32_0 : i32, i32, i32
  }
  func.func @transform_5(%arg0: i32, %arg1: i32) -> (i32, i32, i32) {
    %c0_i32 = arith.constant 0 : i32
    %c0_i32_0 = arith.constant 0 : i32
    %c0_i32_1 = arith.constant 0 : i32
    return %arg1, %c0_i32, %c0_i32_0 : i32, i32, i32
  }
  func.func @transform_6(%arg0: i32, %arg1: i32) -> (i32, i32, i32) {
    %c0_i32 = arith.constant 0 : i32
    %c0_i32_0 = arith.constant 0 : i32
    %c0_i32_1 = arith.constant 0 : i32
    return %arg1, %c0_i32, %c0_i32_0 : i32, i32, i32
  }
  func.func @transform_7(%arg0: i32, %arg1: i32) -> (i32, i32, i32) {
    %c0_i32 = arith.constant 0 : i32
    %c0_i32_0 = arith.constant 0 : i32
    %c0_i32_1 = arith.constant 0 : i32
    return %arg1, %c0_i32, %c0_i32_0 : i32, i32, i32
  }
  func.func @transform_8(%arg0: i32, %arg1: i32) -> (i32, i32, i32) {
    %c0_i32 = arith.constant 0 : i32
    %c0_i32_0 = arith.constant 0 : i32
    %c0_i32_1 = arith.constant 0 : i32
    return %arg1, %c0_i32, %c0_i32_0 : i32, i32, i32
  }
  func.func @transform_9(%arg0: i32, %arg1: i32) -> (i32, i32, i32) {
    %c0_i32 = arith.constant 0 : i32
    %c0_i32_0 = arith.constant 0 : i32
    %c0_i32_1 = arith.constant 0 : i32
    return %arg1, %c0_i32, %c0_i32_0 : i32, i32, i32
  }
  func.func @transform_10(%arg0: i32, %arg1: i32) -> (i32, i32, i32) {
    %c0_i32 = arith.constant 0 : i32
    %c0_i32_0 = arith.constant 0 : i32
    %c0_i32_1 = arith.constant 0 : i32
    return %arg1, %c0_i32, %c0_i32_0 : i32, i32, i32
  }
  func.func @transform_11(%arg0: i32, %arg1: i32) -> (i32, i32, i32) {
    %c0_i32 = arith.constant 0 : i32
    %c0_i32_0 = arith.constant 0 : i32
    %c0_i32_1 = arith.constant 0 : i32
    return %arg1, %c0_i32, %c0_i32_0 : i32, i32, i32
  }
  func.func @transform_12(%arg0: i32, %arg1: i32) -> (i32, i32, i32) {
    %c0_i32 = arith.constant 0 : i32
    %c0_i32_0 = arith.constant 0 : i32
    %c0_i32_1 = arith.constant 0 : i32
    return %arg1, %c0_i32, %c0_i32_0 : i32, i32, i32
  }
  func.func @transform_13(%arg0: i32, %arg1: i32) -> (i32, i32, i32) {
    %c0_i32 = arith.constant 0 : i32
    %c0_i32_0 = arith.constant 0 : i32
    %c0_i32_1 = arith.constant 0 : i32
    return %arg1, %c0_i32, %c0_i32_0 : i32, i32, i32
  }
  func.func @transform_14(%arg0: i32, %arg1: i32) -> (i32, i32, i32) {
    %c0_i32 = arith.constant 0 : i32
    %c0_i32_0 = arith.constant 0 : i32
    %c0_i32_1 = arith.constant 0 : i32
    return %arg0, %c0_i32, %c0_i32_0 : i32, i32, i32
  }
}

module attributes {stable_mosaic.version = 11 : i64} {
  func.func @epilogue_kernel(%arg0: memref<2x8x32xf32, #tpu.memory_space<vmem>>, %arg1: memref<1x32xf32, #tpu.memory_space<vmem>>, %arg2: memref<1x32xf32, #tpu.memory_space<vmem>>, %arg3: memref<2x8xf32, #tpu.memory_space<vmem>>, %arg4: memref<32x16xbf16, #tpu.memory_space<vmem>>, %arg5: memref<2x16xf32, #tpu.memory_space<vmem>>, %arg6: memref<2x8x32xf32, #tpu.memory_space<vmem>>) attributes {dimension_semantics = [], scalar_prefetch = 0 : i64, scratch_operands = 0 : i64, tpu.core_type = #tpu.core_type<tc>} {
    %c0 = arith.constant 0 : index
    %c0_0 = arith.constant 0 : index
    %c0_1 = arith.constant 0 : index
    %0 = vector.load %arg0[%c0, %c0_0, %c0_1] : memref<2x8x32xf32, #tpu.memory_space<vmem>>, vector<2x8x32xf32>
    %c0_2 = arith.constant 0 : index
    %c0_3 = arith.constant 0 : index
    %1 = vector.load %arg1[%c0_2, %c0_3] : memref<1x32xf32, #tpu.memory_space<vmem>>, vector<1x32xf32>
    %c0_4 = arith.constant 0 : index
    %c0_5 = arith.constant 0 : index
    %2 = vector.load %arg2[%c0_4, %c0_5] : memref<1x32xf32, #tpu.memory_space<vmem>>, vector<1x32xf32>
    %cst = arith.constant dense<0.000000e+00> : vector<2x8xf32>
    %3 = vector.multi_reduction <add>, %0, %cst [2] : vector<2x8x32xf32> to vector<2x8xf32>
    %4 = vector.shape_cast %3 : vector<2x8xf32> to vector<2x8x1xf32>
    %cst_6 = arith.constant 3.200000e+01 : f32
    %5 = vector.broadcast %cst_6 : f32 to vector<2x8x1xf32>
    %6 = arith.divf %4, %5 : vector<2x8x1xf32>
    %7 = vector.broadcast %6 : vector<2x8x1xf32> to vector<2x8x32xf32>
    %8 = arith.subf %0, %7 : vector<2x8x32xf32>
    %9 = arith.mulf %8, %8 : vector<2x8x32xf32>
    %cst_7 = arith.constant dense<0.000000e+00> : vector<2x8xf32>
    %10 = vector.multi_reduction <add>, %9, %cst_7 [2] : vector<2x8x32xf32> to vector<2x8xf32>
    %11 = vector.shape_cast %10 : vector<2x8xf32> to vector<2x8x1xf32>
    %cst_8 = arith.constant 3.200000e+01 : f32
    %12 = vector.broadcast %cst_8 : f32 to vector<2x8x1xf32>
    %13 = arith.divf %11, %12 : vector<2x8x1xf32>
    %14 = vector.broadcast %6 : vector<2x8x1xf32> to vector<2x8x32xf32>
    %15 = arith.subf %0, %14 : vector<2x8x32xf32>
    %cst_9 = arith.constant 9.99999974E-6 : f32
    %16 = vector.broadcast %cst_9 : f32 to vector<2x8x1xf32>
    %17 = arith.addf %13, %16 : vector<2x8x1xf32>
    %18 = math.rsqrt %17 : vector<2x8x1xf32>
    %19 = vector.broadcast %18 : vector<2x8x1xf32> to vector<2x8x32xf32>
    %20 = arith.mulf %15, %19 : vector<2x8x32xf32>
    %21 = vector.shape_cast %1 : vector<1x32xf32> to vector<1x1x32xf32>
    %22 = vector.broadcast %21 : vector<1x1x32xf32> to vector<2x8x32xf32>
    %23 = arith.mulf %20, %22 : vector<2x8x32xf32>
    %24 = vector.shape_cast %2 : vector<1x32xf32> to vector<1x1x32xf32>
    %25 = vector.broadcast %24 : vector<1x1x32xf32> to vector<2x8x32xf32>
    %26 = arith.addf %23, %25 : vector<2x8x32xf32>
    %c0_10 = arith.constant 0 : index
    %c0_11 = arith.constant 0 : index
    %c0_12 = arith.constant 0 : index
    %27 = vector.load %arg6[%c0_10, %c0_11, %c0_12] : memref<2x8x32xf32, #tpu.memory_space<vmem>>, vector<2x8x32xf32>
    tpu.vector_store %arg6[%c0_10, %c0_11, %c0_12], %26 {strides = array<i32>} : memref<2x8x32xf32, #tpu.memory_space<vmem>>, vector<2x8x32xf32>,
    %c0_13 = arith.constant 0 : index
    %c0_14 = arith.constant 0 : index
    %28 = vector.load %arg3[%c0_13, %c0_14] : memref<2x8xf32, #tpu.memory_space<vmem>>, vector<2x8xf32>
    %29 = vector.shape_cast %28 : vector<2x8xf32> to vector<2x8x1xf32>
    %30 = vector.broadcast %29 : vector<2x8x1xf32> to vector<2x8x32xf32>
    %31 = arith.mulf %30, %26 : vector<2x8x32xf32>
    %cst_15 = arith.constant dense<0.000000e+00> : vector<2x32xf32>
    %32 = vector.multi_reduction <add>, %31, %cst_15 [1] : vector<2x8x32xf32> to vector<2x32xf32>
    %33 = arith.truncf %32 : vector<2x32xf32> to vector<2x32xbf16>
    %c0_16 = arith.constant 0 : index
    %c0_17 = arith.constant 0 : index
    %34 = vector.load %arg4[%c0_16, %c0_17] : memref<32x16xbf16, #tpu.memory_space<vmem>>, vector<32x16xbf16>
    %cst_18 = arith.constant dense<0.000000e+00> : vector<2x16xf32>
    %35 = tpu.matmul %33, %34, %cst_18 {dimension_numbers = #tpu.dot_dimension_numbers<[1], [0], [0], [1], [0, 0, 1, 1], [], []>} : vector<2x32xbf16>, vector<32x16xbf16>, vector<2x16xf32> -> vector<2x16xf32>
    %c0_19 = arith.constant 0 : index
    %c0_20 = arith.constant 0 : index
    %36 = vector.load %arg5[%c0_19, %c0_20] : memref<2x16xf32, #tpu.memory_space<vmem>>, vector<2x16xf32>
    tpu.vector_store %arg5[%c0_19, %c0_20], %35 {strides = array<i32>} : memref<2x16xf32, #tpu.memory_space<vmem>>, vector<2x16xf32>,
    return
  }
}

</mosaic_0001>

<bundles_post_ra>
// kernel: textual_transformer_forward.3
= control target key start
LH: loop header
LB: loop body
LE: loop exit
PB: predicated region body
PF: predicated region fallthrough
CT: control target
= control target key end

     0   :  { %12 = vsyncpa [#allocation3], 0  ;;  %vm29_vm0 = vcmask 261120   ;;  %s377_s0 = inlined_call_operand.vmem [shape: f32[2,8,32], index: 0, kind: input, shape index: {}]   ;;  %s378_s1 = inlined_call_operand.vmem [shape: f32[1,32], index: 1, kind: input, shape index: {}]   ;;  %s379_s2 = inlined_call_operand.vmem [shape: f32[1,32], index: 2, kind: input, shape index: {}]   ;;  %s380_s3 = inlined_call_operand.vmem [shape: f32[2,8], index: 3, kind: input, shape index: {}]   ;;  %s381_s4 = inlined_call_operand.vmem [shape: bf16[32,16], index: 4, kind: input, shape index: {}]   ;;  %s382_s5 = inlined_call_operand.hbm [shape: f32[2,16], index: 5, kind: output, shape index: {0}]   ;;  %s383_s6 = inlined_call_operand.hbm [shape: f32[2,8,32], index: 6, kind: output, shape index: {1}]  }
   0x1   :  { %v25_v0 = vld [vmem:[%s377_s0] sm:$0xff]  ;;  %v26_v1 = vld [vmem:[%s377_s0 + $0x8] sm:$0xff] }
   0x2   :  { %v30_v2 = vsel %vm29_vm0, %v25_v0, 0.0 }
   0x3   :  { %31 = vadd.xlane.f32.xlu0 %v30_v2 }
   0x4   :  { %13 = vsyncpa [#allocation5], 0  ;;  %v33_v3 = vsel %vm29_vm0, %v26_v1, 0.0  ;;  %v76_v4 = vlaneseq  ;;  %v75_v6 = vld [vmem:[%s380_s3] sm:$0x3]  ;;  %v282_v22 = vmov 0.0  }
   0x5   :  { %v228_v21 = vld [vmem:[%s381_s4] sm:$0xff]   ;;  %214 = vmatprep.subr.bf16.mxu0 %v282_v22  ;;  %v229_v23 = vld [vmem:[%s381_s4 + $0x8] sm:$0xff]   ;;  %vm283_vm1 = vmmov 0   ;;  %vm116_vm2 = vcmask 1041409  }
   0x6   :  { %v77_v5 = vshrl.u32 %v76_v4, 7  ;;  %215 = vmatpush3.bf16.msra.mxu0 %v228_v21  ;;  %218 = vmatprep.mubr.msk.bf16.mxu0 %vm283_vm1, %v282_v22  ;;  %v206_v31 = vld [vmem:[%s378_s1] ss:$0 sm:$0xff]  ;;  %s284_s1 = smov [#allocation4]  }
   0x7   :  { %34 = vadd.xlane.f32.xlu0 %v33_v3  ;;  %216 = vmatprep.subr.bf16.mxu0 %v282_v22  ;;  %v207_v33 = vld [vmem:[%s379_s2] ss:$0 sm:$0xff]  ;;  %s191_s2 = sshll.u32 %s284_s1, 4  ;;  %s192_s2 = int_to_ptr.vmem [resolvable:$true] %s191_s2 }
   0x8   :  { %v78_v7 = vsub.s32 0, %v77_v5  ;;  %v85_v8 = vsub.s32 1, %v77_v5  ;;  %s234_s4 = scalar_lea.vmem %s192_s2, 256  ;;  %p239_p1 = scmp.lt.s32.totalorder %s192_s2, %s192_s2 }
   0x9   :  { %p235_p0 = scmp.ne.s32.totalorder %s192_s2, %s234_s4  ;;  %p240_p2 = scmp.lt.s32.totalorder %s234_s4, %s234_s4 }
   0xa   :  { %v79_v9 = vrot.slane %v75_v6, %v78_v7  ;;  %v86_v10 = vrot.slane %v75_v6, %v85_v8  ;;  %217 = vmatpush3.bf16.msra.mxu0 %v229_v23 }
   0xb   :  { %p241_p3 = por %p240_p2, %p239_p1 }
   0xd   :  { %p242_p4 = pnand %p241_p3, %p235_p0 }
  0x1d   :  { %81 = vbcast.lane.b32.xlu0 %v79_v9, 256 }
  0x90   :  { %v32_v11 = vpop.xlane.xlu0 %31 }
  0x91   :  { %v37_v12 = vmul.f32 0.03125, %v32_v11 }
  0x93   :  { %v39_v13 = vsub.f32 %v25_v0, %v37_v12 }
  0x94   :  { %v35_v14 = vpop.xlane.xlu0 %34 }
  0x95   :  { %v38_v15 = vmul.f32 0.03125, %v35_v14  ;;  %v41_v16 = vmul.f32 %v39_v13, %v39_v13 }
  0x97   :  { %v40_v17 = vsub.f32 %v26_v1, %v38_v15  ;;  %v43_v18 = vsel %vm29_vm0, %v41_v16, 0.0 }
  0x98   :  { %44 = vadd.xlane.f32.xlu1 %v43_v18  ;;  %v82_v36 = vpop.permute.xlu0 %81 }
  0x99   :  { %v42_v19 = vmul.f32 %v40_v17, %v40_v17 }
  0x9b   :  { %v46_v20 = vsel %vm29_vm0, %v42_v19, 0.0 }
  0x9c   :  { %47 = vadd.xlane.f32.xlu1 %v46_v20 }
  0xad   :  { %88 = vbcast.lane.b32.xlu1 %v86_v10, 256 }
 0x125   :  { %v45_v24 = vpop.xlane.xlu1 %44 }
 0x126   :  { %v49_v25 = vmul.f32 0.03125, %v45_v24 }
 0x128   :  { %v51_v26 = vadd.f32 1e-05, %v49_v25 }
 0x129   :  { %v48_v27 = vpop.xlane.xlu1 %47 }
 0x12a   :  { %230 = vrsqrt.f32 %v51_v26  ;;  %v50_v28 = vmul.f32 0.03125, %v48_v27 }
 0x12c   :  { %v52_v29 = vadd.f32 1e-05, %v50_v28 }
 0x12d   :  { %v89_v41 = vpop.permute.xlu1 %88 }
 0x12e   :  { %232 = vrsqrt.f32 %v52_v29 }
 0x134   :  { %v231_v30 = vpop.eup %230 }
 0x135   :  { %v55_v32 = vmul.f32 %v231_v30, %v39_v13 }
 0x137   :  { %v63_v34 = vmul.f32 %v206_v31, %v55_v32 }
 0x138   :  { %v233_v35 = vpop.eup %232 }
 0x139   :  { %v71_v37 = vadd.f32 %v207_v33, %v63_v34  ;;  %v56_v38 = vmul.f32 %v233_v35, %v40_v17 }
 0x13b   :  { %73 = vst.msk [vmem:[#allocation4] sm:$0xff] %vm29_vm0, %v71_v37  ;;  %v90_v39 = vmul.f32 %v82_v36, %v71_v37  ;;  %v64_v40 = vmul.f32 %v206_v31, %v56_v38 }
 0x13d   :  { %v92_v42 = vsel %vm29_vm0, %v90_v39, 0.0  ;;  %v72_v43 = vadd.f32 %v207_v33, %v64_v40 }
 0x13e   :  { %v93_v44 = vrot.slane %v92_v42, 4 }
 0x13f   :  { %74 = vst.msk [vmem:[#allocation4 + $0x8] sm:$0xff] %vm29_vm0, %v72_v43  ;;  %v91_v45 = vmul.f32 %v89_v41, %v72_v43 }
 0x140   :  { %v94_v46 = vadd.f32 %v93_v44, %v92_v42 }
 0x141   :  { %v99_v47 = vsel %vm29_vm0, %v91_v45, 0.0 }
 0x142   :  { %v95_v48 = vrot.slane %v94_v46, 2  ;;  %v100_v49 = vrot.slane %v99_v47, 4 }
 0x144   :  { %v96_v50 = vadd.f32 %v95_v48, %v94_v46  ;;  %v101_v51 = vadd.f32 %v100_v49, %v99_v47 }
 0x146   :  { %v97_v52 = vrot.slane %v96_v50, 1  ;;  %v102_v53 = vrot.slane %v101_v51, 2 }
 0x148   :  { %v98_v54 = vadd.f32 %v97_v52, %v96_v50  ;;  %v103_v55 = vadd.f32 %v102_v53, %v101_v51 }
 0x14a   :  { %v104_v56 = vrot.slane %v103_v55, 1  ;;  %v106_v57 = vpack.c.bf16 %v98_v54, %v98_v54 }
 0x14c   :  { %v105_v58 = vadd.f32 %v104_v56, %v103_v55  ;;  %v114_v60 = vunpack.c.l.b16 %v106_v57 }
 0x14e   :  { %v107_v59 = vpack.c.bf16 %v105_v58, %v105_v58 }
 0x150   :  { %v115_v61 = vunpack.c.l.b16 %v107_v59 }
 0x152   :  { %v117_v62 = vsel %vm116_vm2, %v115_v61, %v114_v60 }
 0x153   :  { %v118_v63 = vpack.c.b16 %v117_v62, %v117_v62 }
 0x155   :  { %219 = vmatmul.mubr.msk.bf16.vlgmr.msra.gmra.mrb[0].mxu0 %vm29_vm0, %v118_v63 }
 0x156   :  { %245 = shalt.err (!%p242_p4)
}
 0x157   :  { %s246_s11 = scalar_lea.hbm %s383_s6, 256 }
 0x158   :  { %p247_p5 = scmp.ne.s32.totalorder %s383_s6, %s246_s11  ;;  %p250_p6 = scmp.lt.u32.totalorder %s246_s11, %s383_s6 }
 0x15a   :  { %p252_p7 = pnand %p250_p6, %p247_p5 }
 0x15c   :  { %255 = shalt.err (!%p252_p7)
}
 0x15d   :  { %s285_s16 = smov 128   ;;  %s286_s17 = smov 8   ;;  %vm174_vm3 = vcmask 123904  }
 0x15e   :  { %197 = dma.vmem_to_hbm [thread:$0]  %s192_s2, 256, %s383_s6, [#allocation5], %s285_s16, %s285_s16, %s286_s17  }
 0x15f   :  { %s287_s20 = smov [#allocation2]  }
 0x160   :  { %s182_s21 = sshll.u32 %s287_s20, 4  ;;  %s183_s21 = int_to_ptr.vmem [resolvable:$true] %s182_s21 }
 0x161   :  { %s256_s22 = scalar_lea.vmem %s183_s21, 32  ;;  %p261_p9 = scmp.lt.s32.totalorder %s183_s21, %s183_s21 }
 0x162   :  { %p257_p8 = scmp.ne.s32.totalorder %s183_s21, %s256_s22  ;;  %p262_p10 = scmp.lt.s32.totalorder %s256_s22, %s256_s22 }
 0x164   :  { %p263_p11 = por %p262_p10, %p261_p9 }
 0x166   :  { %p264_p12 = pnand %p263_p11, %p257_p8 }
 0x228   :  { %v168_v0 = vpop.f32.mrb[0].mxu0 }
 0x229   :  { %v220_v1 = vpop.f32.mrb[1].mxu0  ;;  %175 = vst.msk [vmem:[#allocation2] sm:$0x3] %vm174_vm3, %v168_v0 }
 0x22a   :  { %v171_v2 = vpop.f32.mrb[2].mxu0 }
 0x22b   :  { %267 = shalt.err (!%p264_p12)
}
 0x22c   :  { %s268_s25 = scalar_lea.hbm %s382_s5, 32 }
 0x22d   :  { %p269_p13 = scmp.ne.s32.totalorder %s382_s5, %s268_s25  ;;  %p272_p0 = scmp.lt.u32.totalorder %s268_s25, %s382_s5 }
 0x22f   :  { %p274_p1 = pnand %p272_p0, %p269_p13 }
 0x231   :  { %277 = shalt.err (!%p274_p1)
}
 0x232   :  { %185 = dma.vmem_to_hbm [thread:$0]  %s183_s21, 32, %s382_s5, [#allocation3]   ;;  %v221_v3 = vpop.f32.mrb[3].mxu0 }
 0x233   :  { %278 = dma.done.wait [#allocation3], 32  }
 0x234   :  { %279 = vsyncadd [#allocation3], 4294967264 }
 0x235   :  { %280 = dma.done.wait [#allocation5], 256  }
 0x236   :  { %281 = vsyncadd [#allocation5], 4294967040 }
 0x237   :  { %204 = vsyncpa [#allocation3], 1 }
 0x238   :  { %205 = vsyncpa [#allocation5], 1 }

// kernel: textual_transformer_forward.2
= control target key start
LH: loop header
LB: loop body
LE: loop exit
PB: predicated region body
PF: predicated region fallthrough
CT: control target
= control target key end

     0   :  { %s2114_s29 = smov 0   ;;  %s2116_s30 = smov 0   ;;  %s2387_s0 = inlined_call_operand.vmem [shape: f32[2,8,32], index: 0, kind: input, shape index: {}]   ;;  %s2388_s1 = inlined_call_operand.vmem [shape: f32[8,8], index: 1, kind: input, shape index: {}]   ;;  %s2389_s2 = inlined_call_operand.vmem [shape: f32[2,1,32], index: 2, kind: input, shape index: {}]   ;;  %s2390_s3 = inlined_call_operand.vmem [shape: f32[2,1,32], index: 3, kind: input, shape index: {}]   ;;  %s2391_s4 = inlined_call_operand.vmem [shape: bf16[2,32,96], index: 4, kind: input, shape index: {}]   ;;  %s2392_s5 = inlined_call_operand.vmem [shape: f32[2,1,96], index: 5, kind: input, shape index: {}]   ;;  %s2393_s6 = inlined_call_operand.vmem [shape: bf16[2,32,32], index: 6, kind: input, shape index: {}]   ;;  %s2394_s7 = inlined_call_operand.vmem [shape: f32[2,1,32], index: 7, kind: input, shape index: {}]   ;;  %s2395_s8 = inlined_call_operand.vmem [shape: f32[2,1,32], index: 8, kind: input, shape index: {}]   ;;  %s2396_s9 = inlined_call_operand.vmem [shape: f32[2,1,32], index: 9, kind: input, shape index: {}]   ;;  %s2397_s10 = inlined_call_operand.vmem [shape: bf16[2,32,128], index: 10, kind: input, shape index: {}]   ;;  %s2398_s11 = inlined_call_operand.vmem [shape: f32[2,1,128], index: 11, kind: input, shape index: {}]   ;;  %s2399_s12 = inlined_call_operand.vmem [shape: bf16[2,128,32], index: 12, kind: input, shape index: {}]   ;;  %s2400_s13 = inlined_call_operand.vmem [shape: f32[2,1,32], index: 13, kind: input, shape index: {}]   ;;  %s2401_s14 = inlined_call_operand.vmem [shape: f32[2,8,32], index: 14, kind: output, shape index: {}]  }
   0x1   :  { %2406 = sst [smem:[#allocation8_spill]] %s2387_s0  ;;  %s2118_s15 = smov 0  }
   0x2   :  { %2407 = sst [smem:[#allocation9_spill]] %s2388_s1  ;;  %s2120_s16 = smov 0  }
   0x3   :  { %2408 = sst [smem:[#allocation10_spill]] %s2390_s3  ;;  %s2122_s17 = smov 0  }
   0x4   :  { %2409 = sst [smem:[#allocation11_spill]] %s2391_s4 }
   0x5   :  { %2410 = sst [smem:[#allocation12_spill]] %s2393_s6 }
   0x6   :  { %2411 = sst [smem:[#allocation13_spill]] %s2401_s14 }
   0x7 LB: > { %2412 = sst [smem:[#allocation2_spill]] %s2005_s29  ;;  %s33_s18 = sadd.s32 1, %s2013_s15  ;;  %s2021_s17 = sphi %s2122_s17, %s24_s17   ;;  %s2017_s16 = sphi %s2120_s16, %s2436_s16   ;;  %s2013_s15 = sphi %s2118_s15, %s2435_s15   ;;  %s2009_s30 = sphi %s2116_s30, %s2434_s30   ;;  %s2005_s29 = sphi %s2114_s29, %s2433_s29  }
   0x8   : > { %2413 = sst [smem:[#allocation3_spill]] %s2013_s15  ;;  %s36_s19 = sadd.s32 1, %s2017_s16 }
   0x9   : > { %2414 = sst [smem:[#allocation4_spill]] %s2017_s16  ;;  %p34_p0 = scmp.ge.s32.totalorder %s33_s18, 2 }
   0xa   : > { %2415 = sst [smem:[#allocation5_spill]] %s2021_s17  ;;  %p1711_p1 = scmp.ge.s32.totalorder %s2021_s17, 1 }
   0xb   : > { %p527_p2 = scmp.lt.s32.totalorder %s2021_s17, 5  ;;  %s2438_s18 = smov (%p34_p0, %s33_s18), 0 }
   0xc   : > { %2416 = sst [smem:[#allocation6_spill]] %s2438_s18  ;;  %s2440_s19 = smov (!%p34_p0, %s36_s19), %s2017_s16 }
   0xd   : > { %p528_p3 = pnand %p1711_p1, %p527_p2  ;;  %p38_p4 = scmp.ge.s32.totalorder %s2440_s19, 2 }
   0xe   : > { %p615_p5 = scmp.lt.s32.totalorder (!%p528_p3), %s2009_s30, 1  ;;  %p619_p6 = scmp.lt.s32.totalorder (!%p528_p3), %s2005_s29, 1 }
   0xf   : > { %s2442_s19 = smov (%p38_p4, %s2440_s19), 0  ;;  %531 = sbr.rel (%p528_p3) target bundleno = 2615 (0xa37), region = 76 }
  0x10   : > { %2417 = sst [smem:[#allocation7_spill]] %s2442_s19  ;;  %s2418_s0 = sld [smem:[#allocation8_spill]] (!%p528_p3) }
  0x11   : > { %s2420_s4 = sld [smem:[#allocation11_spill]] (!%p528_p3)  ;;  %s2421_s6 = sld [smem:[#allocation12_spill]] (!%p528_p3) }
  0x16   : > { %s2444_s30 = smov (!%p615_p5, %s2009_s30), 1 }
  0x17   : > { %s2148_s20 = scalar_select %p619_p6, %s2005_s29, 1 }
  0x18   : > { %s1712_s21 = sshll.u32 %s2444_s30, 3 }
  0x19   : > { %s618_s24 = scalar_lea.vmem %s2418_s0, %s1712_s21  ;;  %s1759_s16 = sshll.u32 %s2148_s20, 4 }
  0x1a   : > { %s2165_s1 = scalar_lea.vmem %s2420_s4, %s1759_s16  ;;  %s2174_s0 = scalar_lea.vmem %s2421_s6, %s1759_s16 }
  0x1b   : > { %s2191_s30 = scalar_lea.vmem %s2397_s10, %s1759_s16  ;;  %s654_s14 = scalar_lea.vmem %s2398_s11, %s2148_s20 }
  0x1c   : > { %s1762_s6 = sshll.u32 %s2148_s20, 6  ;;  %s662_s19 = scalar_lea.vmem %s2400_s13, %s2148_s20 }
  0x1d   : > { %s2205_s27 = scalar_lea.vmem %s2399_s12, %s1762_s6  ;;  %s2422_s4 = sld [smem:[#allocation13_spill]] }
  0x1e   : > { %s2423_s16 = sld [smem:[#allocation2_spill]] }
  0x23   : > { %s2210_s3 = scalar_lea.vmem %s2422_s4, %s1712_s21 }
  0x24   : > { %p1722_p7 = scmp.ne.s32.totalorder %s2423_s16, 0 }
  0x25   : > { %v672_v0 = vld [vmem:[%s618_s24] sm:$0xff] (!%p1722_p7)  ;;  %vm673_vm0 = vcmask (!%p1722_p7), 261120  }
  0x26   : > { %671 = sbr.rel (%p1722_p7) target bundleno = 45 (0x2d), region = 80  ;;  %674 = vst.msk [vmem:[%s2210_s3] sm:$0xff] (!%p1722_p7), %vm673_vm0, %v672_v0 }
  0x2d PF: > { %v2215_v1 = vld [vmem:[%s2210_s3] sm:$0xff]  ;;  %vm678_vm1 = vcmask 261120   ;;  %v2023_v9 = vmov 0.0   ;;  %vm2024_vm2 = vmmov 0   ;;  %v1946_v10 = vld [vmem:[%s2165_s1 + $0x8] sm:$0xff]   ;;  %s2425_s29 = sld [smem:[#allocation10_spill]]  ;;  %s2427_s26 = scalar_lea.vmem %s2392_s5, %s2148_s20 }
  0x2e   : > { %v679_v2 = vsel %vm678_vm1, %v2215_v1, 0.0  ;;  %v1945_v8 = vld [vmem:[%s2165_s1] sm:$0xff]   ;;  %1797 = vmatprep.subr.bf16.mxu0 %v2023_v9  ;;  %1801 = vmatprep.mubr.msk.bf16.mxu0 %vm2024_vm2, %v2023_v9  ;;  %s2424_s1 = scalar_lea.vmem %s2389_s2, %s2148_s20  ;;  %s2025_s18 = smov 96   ;;  %vm781_vm3 = vcmask 64512   ;;  %vm845_vm4 = vcmask 1043456   ;;  %vm1233_vm5 = vcmask 130048  }
  0x2f   : > { %680 = vadd.xlane.f32.xlu0 %v679_v2  ;;  %1798 = vmatpush3.bf16.msra.mxu0 %v1945_v8  ;;  %v1723_v15 = vld [vmem:[%s2424_s1] ss:$0 sm:$0xff]  ;;  %s2026_s28 = smov 120   ;;  %s2027_s15 = smov 88   ;;  %vm1235_vm6 = vcmask 195584  }
  0x30   : > { %1817 = vmatprep.subr.bf16.mxu1 %v2023_v9  ;;  %1799 = vmatprep.subr.bf16.mxu0 %v2023_v9  ;;  %v1725_v21 = vld [vmem:[%s2427_s26] ss:$0 sm:$0xff]  ;;  %s2028_s17 = smov 80   ;;  %s2029_s16 = smov 112  }
  0x31   : > { %1819 = vmatprep.mubr.msk.bf16.mxu1 %vm2024_vm2, %v2023_v9  ;;  %s2030_s4 = smov 72   ;;  %s2031_s6 = smov 104  }
  0x32   : > { %s2428_s24 = sld [smem:[#allocation9_spill]]  ;;  %s2034_s23 = smov 48  }
  0x33   : > { %1800 = vmatpush3.bf16.msra.mxu0 %v1946_v10  ;;  %s2426_s22 = scalar_lea.vmem %s2425_s29, %s2148_s20  ;;  %s2032_s29 = smov 64  }
  0x34   : > { %1805 = vmatprep.subr.bf16.mxu0 %v2023_v9  ;;  %v1724_v17 = vld [vmem:[%s2426_s22] ss:$0 sm:$0xff]  ;;  %s2033_s22 = smov 56   ;;  %s2035_s25 = smov 40  }
  0x35   : > { %s2036_s26 = smov 8  }
  0x38   : > { %v774_v41 = vld [vmem:[%s2428_s24] sm:$0xff] }
  0xbc   : > { %v681_v3 = vpop.xlane.xlu0 %680 }
  0xbd   : > { %v683_v4 = vmul.f32 0.03125, %v681_v3 }
  0xbf   : > { %v684_v5 = vsub.f32 %v2215_v1, %v683_v4 }
  0xc1   : > { %v685_v6 = vmul.f32 %v684_v5, %v684_v5 }
  0xc3   : > { %v686_v7 = vsel %vm678_vm1, %v685_v6, 0.0 }
  0xc4   : > { %687 = vadd.xlane.f32.xlu0 %v686_v7 }
 0x151   : > { %v688_v11 = vpop.xlane.xlu0 %687 }
 0x152   : > { %v689_v12 = vmul.f32 0.03125, %v688_v11 }
 0x154   : > { %v690_v13 = vadd.f32 1e-05, %v689_v12 }
 0x156   : > { %1959 = vrsqrt.f32 %v690_v13 }
 0x160   : > { %v1960_v14 = vpop.eup %1959 }
 0x161   : > { %v692_v16 = vmul.f32 %v1960_v14, %v684_v5 }
 0x163   : > { %v699_v18 = vmul.f32 %v1723_v15, %v692_v16 }
 0x165   : > { %v706_v19 = vadd.f32 %v1724_v17, %v699_v18 }
 0x167   : > { %v707_v20 = vpack.c.bf16 %v706_v19, %v706_v19 }
 0x169   : > { %1802 = vmatmul.mubr.msk.bf16.vlgmr.msra.gmra.mrb[0].mxu0 %vm678_vm1, %v707_v20 }
 0x16a   : > { %1807 = vmatprep.mubr.msk.bf16.mxu0 %vm2024_vm2, %v2023_v9 }
 0x23c   : > { %v768_v22 = vpop.f32.mrb[0].mxu0 }
 0x23d   : > { %v769_v23 = vadd.f32 %v1725_v21, %v768_v22  ;;  %v1803_v24 = vpop.f32.mrb[1].mxu0 }
 0x23e   : > { %v771_v25 = vpop.f32.mrb[2].mxu0 }
 0x23f   : > { %v775_v26 = vmul.f32 0.35355338, %v769_v23  ;;  %v2249_v27 = vpack.c.bf16 %v769_v23, %v769_v23  ;;  %v1804_v28 = vpop.f32.mrb[3].mxu0 }
 0x241   : > { %v776_v29 = vpack.c.bf16 %v775_v26, %v775_v26  ;;  %779 = vrot.lane.b32.xlu1 %v2249_v27, %s2025_s18  ;;  %s2037_s18 = smov 16  }
 0x243   : > { %890 = vrot.lane.b32.xlu0 %v776_v29, %s2026_s28  ;;  %s2038_s28 = smov 24  }
 0x245   : > { %892 = vrot.lane.b32.xlu1 %v2249_v27, %s2027_s15 }
 0x249   : > { %1002 = vrot.lane.b32.xlu1 %v2249_v27, %s2028_s17  ;;  %s2429_s17 = scalar_lea.vmem %s2394_s7, %s2148_s20 }
 0x24d   : > { %1000 = vrot.lane.b32.xlu1 %v776_v29, %s2029_s16 }
 0x251   : > { %1112 = vrot.lane.b32.xlu1 %v2249_v27, %s2030_s4 }
 0x255   : > { %1110 = vrot.lane.b32.xlu1 %v776_v29, %s2031_s6  ;;  %s2430_s6 = scalar_lea.vmem %s2395_s8, %s2148_s20 }
 0x2b3   : > { %v780_v30 = vpop.permute.xlu1 %779 }
 0x2b4   : > { %v786_v31 = vsel %vm781_vm3, %v780_v30, 0 }
 0x2b5   : > { %1806 = vmatpush3.bf16.xpose.msra.mxu0 %v786_v31  ;;  %v891_v35 = vpop.permute.xlu0 %890 }
 0x2b6   : > { %1811 = vmatprep.subr.bf16.mxu0 %v2023_v9 }
 0x2b7   : > { %v893_v32 = vpop.permute.xlu1 %892 }
 0x2b8   : > { %v898_v33 = vsel %vm781_vm3, %v893_v32, 0 }
 0x2b9   : > { %1818 = vmatpush3.bf16.xpose.msra.mxu1 %v898_v33 }
 0x2ba   : > { %1829 = vmatprep.subr.bf16.mxu1 %v2023_v9 }
 0x2bb   : > { %v1003_v34 = vpop.permute.xlu1 %1002 }
 0x2bc   : > { %1808 = vmatmul.mubr.msk.bf16.vlgmr.msra.gmra.mrb[4].mxu0 %vm781_vm3, %v776_v29  ;;  %v1008_v37 = vsel %vm781_vm3, %v1003_v34, 0 }
 0x2bd   : > { %1813 = vmatprep.mubr.msk.bf16.mxu0 %vm2024_vm2, %v2023_v9 }
 0x2bf   : > { %v1001_v36 = vpop.permute.xlu1 %1000 }
 0x2c0   : > { %1820 = vmatmul.mubr.msk.bf16.vlgmr.msra.gmra.mrb[0].mxu1 %vm781_vm3, %v891_v35 }
 0x2c1   : > { %1830 = vmatpush3.bf16.xpose.msra.mxu1 %v1008_v37  ;;  %1831 = vmatprep.mubr.msk.bf16.mxu1 %vm2024_vm2, %v2023_v9 }
 0x2c2   : > { %1841 = vmatprep.subr.bf16.mxu1 %v2023_v9 }
 0x2c3   : > { %v1113_v38 = vpop.permute.xlu1 %1112 }
 0x2c4   : > { %v1118_v39 = vsel %vm781_vm3, %v1113_v38, 0 }
 0x2c7   : > { %v1111_v40 = vpop.permute.xlu1 %1110 }
 0x2c8   : > { %1832 = vmatmul.mubr.msk.bf16.vlgmr.msra.gmra.mrb[4].mxu1 %vm781_vm3, %v1001_v36 }
 0x2c9   : > { %1842 = vmatpush3.bf16.xpose.msra.mxu1 %v1118_v39  ;;  %1843 = vmatprep.mubr.msk.bf16.mxu1 %vm2024_vm2, %v2023_v9 }
 0x2ca   : > { %1853 = vmatprep.subr.bf16.mxu1 %v2023_v9 }
 0x2d0   : > { %1844 = vmatmul.mubr.msk.bf16.vlgmr.msra.gmra.mrb[8].mxu1 %vm781_vm3, %v1111_v40 }
 0x2d1   : > { %1857 = vmatprep.mubr.msk.bf16.mxu1 %vm2024_vm2, %v2023_v9 }
 0x38f   : > { %v822_v42 = vpop.f32.mrb[4].mxu0 }
 0x390   : > { %v823_v43 = vadd.f32 %v822_v42, %v774_v41  ;;  %v1809_v44 = vpop.f32.mrb[5].mxu0 }
 0x391   : > { %v825_v45 = vpop.f32.mrb[6].mxu0 }
 0x392   : > { %v1810_v46 = vpop.f32.mrb[7].mxu0  ;;  %v828_v47 = vsel %vm781_vm3, %v823_v43, -inf }
 0x393   : > { %v934_v48 = vpop.f32.mrb[0].mxu1  ;;  %829 = vmax.xlane.f32.xlu1 %v828_v47 }
 0x394   : > { %v935_v49 = vadd.f32 %v934_v48, %v774_v41  ;;  %v1821_v50 = vpop.f32.mrb[1].mxu1 }
 0x395   : > { %v937_v51 = vpop.f32.mrb[2].mxu1 }
 0x396   : > { %v1822_v52 = vpop.f32.mrb[3].mxu1  ;;  %v940_v53 = vsel %vm781_vm3, %v935_v49, -inf }
 0x397   : > { %941 = vmax.xlane.f32.xlu0 %v940_v53 }
 0x39b   : > { %v1044_v54 = vpop.f32.mrb[4].mxu1 }
 0x39c   : > { %v1045_v55 = vadd.f32 %v1044_v54, %v774_v41  ;;  %v1833_v56 = vpop.f32.mrb[5].mxu1 }
 0x39d   : > { %v1047_v57 = vpop.f32.mrb[6].mxu1  ;;  %v1947_v56 = vld [vmem:[%s2174_s0] sm:$0xff]  }
 0x39e   : > { %v1834_v58 = vpop.f32.mrb[7].mxu1  ;;  %v1050_v59 = vsel %vm781_vm3, %v1045_v55, -inf  ;;  %1854 = vmatpush3.bf16.msra.mxu1 %v1947_v56  ;;  %v1948_v57 = vld [vmem:[%s2174_s0 + $0x8] sm:$0xff]  }
 0x39f   : > { %1051 = vmax.xlane.f32.xlu1 %v1050_v59  ;;  %1855 = vmatprep.subr.bf16.mxu1 %v2023_v9 }
 0x3a2   : > { %1856 = vmatpush3.bf16.msra.mxu1 %v1948_v57 }
 0x3a3   : > { %v1154_v60 = vpop.f32.mrb[8].mxu1  ;;  %1869 = vmatprep.subr.bf16.mxu1 %v2023_v9 }
 0x3a4   : > { %v1155_v61 = vadd.f32 %v1154_v60, %v774_v41  ;;  %v1845_v62 = vpop.f32.mrb[9].mxu1 }
 0x3a5   : > { %v1157_v63 = vpop.f32.mrb[10].mxu1 }
 0x3a6   : > { %v1846_v0 = vpop.f32.mrb[11].mxu1  ;;  %v1160_v2 = vsel %vm781_vm3, %v1155_v61, -inf }
 0x3a7   : > { %1161 = vmax.xlane.f32.xlu0 %v1160_v2 }
 0x420   : > { %v830_v3 = vpop.xlane.xlu1 %829 }
 0x421   : > { %v831_v4 = vsub.f32 %v823_v43, %v830_v3 }
 0x423   : > { %v832_v5 = vmul.f32 1.442695, %v831_v4 }
 0x424   : > { %v942_v6 = vpop.xlane.xlu0 %941 }
 0x425   : > { %1961 = vpow2.f32 %v832_v5  ;;  %v943_v7 = vsub.f32 %v935_v49, %v942_v6 }
 0x427   : > { %v944_v8 = vmul.f32 1.442695, %v943_v7 }
 0x429   : > { %1963 = vpow2.f32 %v944_v8 }
 0x42c   : > { %v1052_v19 = vpop.xlane.xlu1 %1051 }
 0x42d   : > { %v1053_v20 = vsub.f32 %v1045_v55, %v1052_v19 }
 0x42f   : > { %v1962_v10 = vpop.eup %1961  ;;  %v1054_v21 = vmul.f32 1.442695, %v1053_v20 }
 0x430   : > { %v834_v11 = vsel %vm781_vm3, %v1962_v10, 0.0 }
 0x431   : > { %835 = vadd.xlane.f32.xlu1 %v834_v11  ;;  %v1737_v11 = vld [vmem:[%s2429_s17] ss:$0 sm:$0xff] }
 0x433   : > { %v1964_v12 = vpop.eup %1963 }
 0x434   : > { %v1162_v13 = vpop.xlane.xlu0 %1161  ;;  %v946_v14 = vsel %vm781_vm3, %v1964_v12, 0.0 }
 0x435   : > { %v1163_v15 = vsub.f32 %v1155_v61, %v1162_v13  ;;  %947 = vadd.xlane.f32.xlu0 %v946_v14 }
 0x437   : > { %v1164_v16 = vmul.f32 1.442695, %v1163_v15 }
 0x439   : > { %1965 = vpow2.f32 %v1164_v16 }
 0x43a   : > { %1967 = vpow2.f32 %v1054_v21 }
 0x442   : > { %840 = vrot.lane.b32.xlu1 %v2249_v27, %s2032_s29 }
 0x443   : > { %v1966_v17 = vpop.eup %1965 }
 0x444   : > { %v1166_v18 = vsel %vm781_vm3, %v1966_v17, 0.0  ;;  %v1968_v22 = vpop.eup %1967 }
 0x445   : > { %1167 = vadd.xlane.f32.xlu0 %v1166_v18  ;;  %v1056_v23 = vsel %vm781_vm3, %v1968_v22, 0.0 }
 0x45b   : > { %952 = vrot.lane.b32.xlu0 %v2249_v27, %s2033_s22 }
 0x466   : > { %1057 = vadd.xlane.f32.xlu1 %v1056_v23 }
 0x477   : > { %1062 = vrot.lane.b32.xlu1 %v2249_v27, %s2034_s23 }
 0x47b   : > { %1172 = vrot.lane.b32.xlu1 %v2249_v27, %s2035_s25 }
 0x4be   : > { %v836_v24 = vpop.xlane.xlu1 %835 }
 0x4bf   : > { %1969 = vrcp.f32 %v836_v24  ;;  %v1949_v24 = vld [vmem:[%s2191_s30] sm:$0xff]  }
 0x4c2   : > { %v841_v25 = vpop.permute.xlu1 %840  ;;  %v948_v28 = vpop.xlane.xlu0 %947 }
 0x4c3   : > { %v847_v26 = vsel %vm845_vm4, %v841_v25, 0  ;;  %1971 = vrcp.f32 %v948_v28 }
 0x4c4   : > { %1812 = vmatpush3.bf16.msra.mxu0 %v847_v26 }
 0x4c5   : > { %1823 = vmatprep.subr.bf16.mxu0 %v2023_v9 }
 0x4c9   : > { %v1970_v29 = vpop.eup %1969 }
 0x4ca   : > { %v838_v30 = vmul.f32 %v1970_v29, %v1962_v10 }
 0x4cc   : > { %v839_v31 = vpack.c.bf16 %v838_v30, %v838_v30  ;;  %v1741_v30 = vld [vmem:[%s2430_s6] ss:$0 sm:$0xff] }
 0x4cd   : > { %v1972_v27 = vpop.eup %1971 }
 0x4ce   : > { %1814 = vmatmul.mubr.msk.bf16.vlgmr.msra.gmra.mrb[8].mxu0 %vm781_vm3, %v839_v31  ;;  %v950_v33 = vmul.f32 %v1972_v27, %v1964_v12 }
 0x4cf   : > { %1825 = vmatprep.mubr.msk.bf16.mxu0 %vm2024_vm2, %v2023_v9 }
 0x4d0   : > { %v951_v36 = vpack.c.bf16 %v950_v33, %v950_v33 }
 0x4d2   : > { %v1168_v32 = vpop.xlane.xlu0 %1167 }
 0x4d6   : > { %v953_v34 = vpop.permute.xlu0 %952 }
 0x4d7   : > { %v958_v35 = vsel %vm845_vm4, %v953_v34, 0 }
 0x4d8   : > { %1824 = vmatpush3.bf16.msra.mxu0 %v958_v35  ;;  %v1951_v35 = vld [vmem:[%s2205_s27] sm:$0xff]  }
 0x4d9   : > { %1835 = vmatprep.subr.bf16.mxu0 %v2023_v9 }
 0x4db   : > { %1826 = vmatmul.mubr.msk.bf16.vlgmr.msra.gmra.mrb[12].mxu0 %vm781_vm3, %v951_v36  ;;  %v1952_v36 = vld [vmem:[%s2205_s27 + $0x8] sm:$0xff]  }
 0x4dc   : > { %1837 = vmatprep.mubr.msk.bf16.mxu0 %vm2024_vm2, %v2023_v9 }
 0x4f3   : > { %v1058_v37 = vpop.xlane.xlu1 %1057 }
 0x4f4   : > { %1973 = vrcp.f32 %v1058_v37  ;;  %v1953_v37 = vld [vmem:[%s2205_s27 + $0x10] sm:$0xff]  }
 0x4f5   : > { %1975 = vrcp.f32 %v1168_v32 }
 0x4f7   : > { %v1063_v38 = vpop.permute.xlu1 %1062 }
 0x4f8   : > { %v1068_v39 = vsel %vm845_vm4, %v1063_v38, 0  ;;  %v1954_v38 = vld [vmem:[%s2205_s27 + $0x18] sm:$0xff]  }
 0x4f9   : > { %1836 = vmatpush3.bf16.msra.mxu0 %v1068_v39  ;;  %v1955_v39 = vld [vmem:[%s2205_s27 + $0x20] sm:$0xff]  }
 0x4fa   : > { %1847 = vmatprep.subr.bf16.mxu0 %v2023_v9 }
 0x4fb   : > { %v1173_v42 = vpop.permute.xlu1 %1172 }
 0x4fc   : > { %v1178_v45 = vsel %vm845_vm4, %v1173_v42, 0  ;;  %v1958_v42 = vld [vmem:[%s2205_s27 + $0x38] sm:$0xff]  }
 0x4fe   : > { %v1974_v40 = vpop.eup %1973 }
 0x4ff   : > { %v1060_v41 = vmul.f32 %v1974_v40, %v1968_v22  ;;  %v1976_v44 = vpop.eup %1975  ;;  %v1956_v40 = vld [vmem:[%s2205_s27 + $0x28] sm:$0xff]  }
 0x500   : > { %v1170_v46 = vmul.f32 %v1976_v44, %v1966_v17 }
 0x501   : > { %v1061_v43 = vpack.c.bf16 %v1060_v41, %v1060_v41  ;;  %v1957_v41 = vld [vmem:[%s2205_s27 + $0x30] sm:$0xff]  }
 0x502   : > { %v1171_v47 = vpack.c.bf16 %v1170_v46, %v1170_v46 }
 0x503   : > { %1838 = vmatmul.mubr.msk.bf16.vlgmr.msra.gmra.mrb[16].mxu0 %vm781_vm3, %v1061_v43  ;;  %v1743_v43 = vld [vmem:[%s654_s14] ss:$0 sm:$0xff] }
 0x504   : > { %1848 = vmatpush3.bf16.msra.mxu0 %v1178_v45  ;;  %1849 = vmatprep.mubr.msk.bf16.mxu0 %vm2024_vm2, %v2023_v9 }
 0x505   : > { %1861 = vmatprep.subr.bf16.mxu0 %v2023_v9 }
 0x50b   : > { %1850 = vmatmul.mubr.msk.bf16.vlgmr.msra.gmra.mrb[20].mxu0 %vm781_vm3, %v1171_v47 }
 0x50c   : > { %1865 = vmatprep.mubr.msk.bf16.mxu0 %vm2024_vm2, %v2023_v9  ;;  %1862 = vmatpush3.bf16.msra.mxu0 %v1949_v24 }
 0x50d   : > { %1863 = vmatprep.subr.bf16.mxu0 %v2023_v9 }
 0x5a1   : > { %v883_v48 = vpop.f32.mrb[8].mxu0 }
 0x5a2   : > { %v1815_v49 = vpop.f32.mrb[9].mxu0 }
 0x5a3   : > { %v886_v50 = vpop.f32.mrb[10].mxu0 }
 0x5a4   : > { %v1816_v51 = vpop.f32.mrb[11].mxu0 }
 0x5ae   : > { %v994_v52 = vpop.f32.mrb[12].mxu0 }
 0x5af   : > { %1221 = vrot.lane.b32.xlu0 %v994_v52, %s2036_s26  ;;  %v1827_v53 = vpop.f32.mrb[13].mxu0 }
 0x5b0   : > { %v997_v54 = vpop.f32.mrb[14].mxu0 }
 0x5b1   : > { %v1828_v55 = vpop.f32.mrb[15].mxu0 }
 0x5b2   : > { %v1748_v55 = vld [vmem:[%s662_s19] ss:$0 sm:$0xff] }
 0x5d6   : > { %v1104_v58 = vpop.f32.mrb[16].mxu0 }
 0x5d7   : > { %1225 = vrot.lane.b32.xlu1 %v1104_v58, %s2037_s18  ;;  %v1839_v59 = vpop.f32.mrb[17].mxu0 }
 0x5d8   : > { %v1107_v60 = vpop.f32.mrb[18].mxu0 }
 0x5d9   : > { %v1840_v61 = vpop.f32.mrb[19].mxu0 }
 0x5de   : > { %v1214_v62 = vpop.f32.mrb[20].mxu0 }
 0x5df   : > { %1229 = vrot.lane.b32.xlu0 %v1214_v62, %s2038_s28  ;;  %v1851_v63 = vpop.f32.mrb[21].mxu0 }
 0x5e0   : > { %v1217_v0 = vpop.f32.mrb[22].mxu0 }
 0x5e1   : > { %v1852_v2 = vpop.f32.mrb[23].mxu0 }
 0x621   : > { %v1222_v3 = vpop.permute.xlu0 %1221 }
 0x622   : > { %v1232_v5 = vsel %vm781_vm3, %v883_v48, %v1222_v3 }
 0x649   : > { %v1226_v4 = vpop.permute.xlu1 %1225 }
 0x64a   : > { %v1234_v6 = vsel %vm1233_vm5, %v1232_v5, %v1226_v4 }
 0x651   : > { %v1230_v7 = vpop.permute.xlu0 %1229 }
 0x652   : > { %v1236_v8 = vsel %vm1235_vm6, %v1234_v6, %v1230_v7 }
 0x653   : > { %v1237_v10 = vpack.c.bf16 %v1236_v8, %v1236_v8 }
 0x655   : > { %1858 = vmatmul.mubr.msk.bf16.vlgmr.msra.gmra.mrb[12].mxu1 %vm678_vm1, %v1237_v10 }
 0x656   : > { %1885 = vmatprep.mubr.msk.bf16.mxu1 %vm2024_vm2, %v2023_v9  ;;  %1870 = vmatpush3.bf16.msra.mxu1 %v1951_v35 }
 0x657   : > { %1871 = vmatprep.subr.bf16.mxu1 %v2023_v9 }
 0x65a   : > { %1872 = vmatpush3.bf16.msra.mxu1 %v1952_v36 }
 0x65b   : > { %1873 = vmatprep.subr.bf16.mxu1 %v2023_v9 }
 0x65e   : > { %1874 = vmatpush3.bf16.msra.mxu1 %v1953_v37 }
 0x65f   : > { %1875 = vmatprep.subr.bf16.mxu1 %v2023_v9 }
 0x662   : > { %1876 = vmatpush3.bf16.msra.mxu1 %v1954_v38 }
 0x663   : > { %1877 = vmatprep.subr.bf16.mxu1 %v2023_v9 }
 0x666   : > { %1878 = vmatpush3.bf16.msra.mxu1 %v1955_v39 }
 0x667   : > { %1879 = vmatprep.subr.bf16.mxu1 %v2023_v9 }
 0x66a   : > { %1880 = vmatpush3.bf16.msra.mxu1 %v1956_v40 }
 0x66b   : > { %1881 = vmatprep.subr.bf16.mxu1 %v2023_v9 }
 0x66e   : > { %1882 = vmatpush3.bf16.msra.mxu1 %v1957_v41 }
 0x66f   : > { %1883 = vmatprep.subr.bf16.mxu1 %v2023_v9 }
 0x672   : > { %1884 = vmatpush3.bf16.msra.mxu1 %v1958_v42 }
 0x728   : > { %v1298_v12 = vpop.f32.mrb[12].mxu1 }
 0x729   : > { %v1299_v13 = vadd.f32 %v1737_v11, %v1298_v12  ;;  %v1859_v14 = vpop.f32.mrb[13].mxu1 }
 0x72a   : > { %v1301_v15 = vpop.f32.mrb[14].mxu1 }
 0x72b   : > { %v2324_v16 = vadd.f32 %v1299_v13, %v2215_v1  ;;  %v1860_v17 = vpop.f32.mrb[15].mxu1  ;;  %v1950_v1 = vld [vmem:[%s2191_s30 + $0x8] sm:$0xff]   ;;  %s2431_s30 = scalar_lea.vmem %s2396_s9, %s2148_s20 }
 0x72c   : > { %1864 = vmatpush3.bf16.msra.mxu0 %v1950_v1  ;;  %v1742_v27 = vld [vmem:[%s2431_s30] ss:$0 sm:$0xff] }
 0x72d   : > { %v1307_v18 = vsel %vm678_vm1, %v2324_v16, 0.0 }
 0x72e   : > { %1308 = vadd.xlane.f32.xlu1 %v1307_v18 }
 0x7bb   : > { %v1309_v19 = vpop.xlane.xlu1 %1308 }
 0x7bc   : > { %v1310_v20 = vmul.f32 0.03125, %v1309_v19 }
 0x7be   : > { %v1311_v21 = vsub.f32 %v2324_v16, %v1310_v20 }
 0x7c0   : > { %v1312_v22 = vmul.f32 %v1311_v21, %v1311_v21 }
 0x7c2   : > { %v1313_v23 = vsel %vm678_vm1, %v1312_v22, 0.0 }
 0x7c3   : > { %1314 = vadd.xlane.f32.xlu0 %v1313_v23 }
 0x850   : > { %v1315_v25 = vpop.xlane.xlu0 %1314 }
 0x851   : > { %v1316_v26 = vmul.f32 0.03125, %v1315_v25 }
 0x853   : > { %v1317_v28 = vadd.f32 1e-05, %v1316_v26 }
 0x855   : > { %1977 = vrsqrt.f32 %v1317_v28 }
 0x85f   : > { %v1978_v29 = vpop.eup %1977 }
 0x860   : > { %v1319_v31 = vmul.f32 %v1978_v29, %v1311_v21 }
 0x862   : > { %v1326_v32 = vmul.f32 %v1741_v30, %v1319_v31 }
 0x864   : > { %v1333_v33 = vadd.f32 %v1742_v27, %v1326_v32 }
 0x866   : > { %v1334_v34 = vpack.c.bf16 %v1333_v33, %v1333_v33 }
 0x868   : > { %1866 = vmatmul.mubr.msk.bf16.vlgmr.msra.gmra.mrb[24].mxu0 %vm678_vm1, %v1334_v34 }
 0x93b   : > { %v1395_v44 = vpop.f32.mrb[24].mxu0 }
 0x93c   : > { %v1396_v45 = vadd.f32 %v1743_v43, %v1395_v44  ;;  %v1867_v46 = vpop.f32.mrb[25].mxu0 }
 0x93d   : > { %v1398_v47 = vpop.f32.mrb[26].mxu0 }
 0x93e   : > { %v1747_v48 = vmul.f32 -1.702, %v1396_v45  ;;  %v1868_v49 = vpop.f32.mrb[27].mxu0 }
 0x940   : > { %v1403_v50 = vmul.f32 1.442695, %v1747_v48 }
 0x942   : > { %1979 = vpow2.f32 %v1403_v50 }
 0x94c   : > { %v1980_v51 = vpop.eup %1979 }
 0x94d   : > { %v1405_v52 = vadd.f32 1.0, %v1980_v51 }
 0x94f   : > { %1981 = vrcp.f32 %v1405_v52 }
 0x959   : > { %v1982_v9 = vpop.eup %1981 }
 0x95a   : > { %v1408_v53 = vmul.f32 %v1982_v9, %v1396_v45 }
 0x95c   : > { %v1409_v54 = vpack.c.bf16 %v1408_v53, %v1408_v53 }
 0x95e   : > { %1886 = vmatmul.mubr.bf16.vlgmr.msra.gmra.mrb[16].mxu1 %v1409_v54 }
 0xa31   : > { %v1515_v56 = vpop.f32.mrb[16].mxu1 }
 0xa32   : > { %v1516_v57 = vadd.f32 %v1748_v55, %v1515_v56  ;;  %v1887_v58 = vpop.f32.mrb[17].mxu1 }
 0xa33   : > { %v1518_v59 = vpop.f32.mrb[18].mxu1 }
 0xa34   : > { %v1521_v60 = vadd.f32 %v1516_v57, %v2324_v16  ;;  %v1888_v61 = vpop.f32.mrb[19].mxu1 }
 0xa36   : > { %1522 = vst.msk [vmem:[%s2210_s3] sm:$0xff] %vm678_vm1, %v1521_v60 }
 0xa37 PF: > { %s2432_s14 = sld [smem:[#allocation5_spill]]  ;;  %s2433_s29 = sld [smem:[#allocation3_spill]] }
 0xa38   : > { %s2434_s30 = sld [smem:[#allocation4_spill]]  ;;  %s2435_s15 = sld [smem:[#allocation6_spill]] }
 0xa39   : > { %s2436_s16 = sld [smem:[#allocation7_spill]] }
 0xa3d   : > { %s24_s17 = sadd.s32 1, %s2432_s14  }
 0xa3e   : > { %p21_p8 = scmp.ge.s32.totalorder %s24_s17, 6  }
 0xa40   :  { %23 = sbr.rel (!%p21_p8) target bundleno = 7 (0x7), region = 146 }

</bundles_post_ra>
